<compile_context>
chip_gen: v7x
topology: tpu7x:2x2x1
jax: 0.10.0
libtpu: 0.0.40
codegen_flags: <defaults>
</compile_context>

<pallas_src>
import jax
import jax.numpy as jnp
from jax.experimental import pallas as pl
from jax.experimental.pallas import tpu as pltpu

# ---- problem sizes (small, TPU-tile friendly) -------------------------------
B = 2                 # batch
S = 8                 # sequence length
H = 128               # hidden size (lane-aligned)
F = 256               # MLP intermediate size
V = 256               # vocab size (policy logits)
NUM_MODELS = 4        # [policy, main_value, constraint_value_1, constraint_value_2]
MODELS_PER_BLOCK = 2  # 2 grid steps total; v7x megacore runs 1 step per TC
NUM_STEPS = NUM_MODELS // MODELS_PER_BLOCK
NEG_INF = -1e9

# packed weight layouts
WH_WIDTH = 3 * H + H + F   # Wq|Wk|Wv|Wo|W1 along the lane axis -> 768
VEC_WIDTH = F + 2 * H      # b1|b2|score    along the lane axis -> 512


# ---- fused Pallas kernel ----------------------------------------------------
def _layernorm(x, eps=1e-5):
    # TODO(synk): no learned affine (gamma/beta); PyTorch nn.LayerNorm defaults to affine=True.
    mu = jnp.mean(x, axis=-1, keepdims=True)
    var = jnp.mean((x - mu) ** 2, axis=-1, keepdims=True)
    return (x - mu) * jax.lax.rsqrt(var + eps)


def fused_kernel(bias_ref, x_ref, wh_ref, w2_ref, vec_ref, lm_ref,
                 logits_ref, scores_ref):
    """Transformer block + fused heads for MODELS_PER_BLOCK models per grid step."""
    bias = bias_ref[...]                                        # (B, S, S) resident additive mask

    for m in range(MODELS_PER_BLOCK):                           # unrolled local-model loop
        x = x_ref[m].astype(jnp.float32).reshape(B * S, H)      # f32 residual stream

        # packed per-model weights / vectors (static, lane-aligned slices)
        w_qkv = wh_ref[m, :, :3 * H]                            # (H, 3H) bf16
        w_o = wh_ref[m, :, 3 * H:4 * H]                         # (H, H)  bf16
        w_1 = wh_ref[m, :, 4 * H:]                              # (H, F)  bf16
        b1 = vec_ref[m, :, :F]                                  # (1, F)  f32
        b2 = vec_ref[m, :, F:F + H]                             # (1, H)  f32
        sw = vec_ref[m, :, F + H:]                              # (1, H)  f32 score head

        # --- attention (LN in f32; matmuls bf16 with f32 accumulation) ---
        h = _layernorm(x).astype(jnp.bfloat16)
        qkv = jnp.dot(h, w_qkv, preferred_element_type=jnp.float32)     # (B*S, 3H)
        q = qkv[:, :H].reshape(B, S, H)
        k = qkv[:, H:2 * H].reshape(B, S, H)
        v = qkv[:, 2 * H:].reshape(B, S, H)

        att = jnp.einsum('bqd,bkd->bqk',
                         q.astype(jnp.bfloat16), k.astype(jnp.bfloat16),
                         preferred_element_type=jnp.float32) * (1.0 / (H ** 0.5))
        att = att + bias
        att = att - jnp.max(att, axis=-1, keepdims=True)
        p = jnp.exp(att)
        p = p * pl.reciprocal(jnp.sum(p, axis=-1, keepdims=True), approx=True)
        attn = jnp.einsum('bqk,bkd->bqd',
                          p.astype(jnp.bfloat16), v.astype(jnp.bfloat16),
                          preferred_element_type=jnp.float32)
        x = x + jnp.dot(attn.reshape(B * S, H).astype(jnp.bfloat16), w_o,
                        preferred_element_type=jnp.float32)

        # --- MLP ---
        h2 = _layernorm(x).astype(jnp.bfloat16)
        mm = jnp.dot(h2, w_1, preferred_element_type=jnp.float32) + b1
        # TODO(synk): PyTorch nn.GELU defaults to exact erf; tanh approximation used here.
        mm = jax.nn.gelu(mm, approximate=True).astype(jnp.bfloat16)
        x = x + jnp.dot(mm, w2_ref[m], preferred_element_type=jnp.float32) + b2

        # --- value score head (VPU multiply + lane reduce; zero weights for policy) ---
        scores_ref[m] = jnp.sum(x.reshape(B, S, H) * sw.reshape(1, 1, H),
                                axis=-1).astype(scores_ref.dtype)

        # --- LM head: policy model only (global model index 0) ---
        if m == 0:
            @pl.when(pl.program_id(0) == 0)
            def _():
                logits = jnp.dot(x.astype(jnp.bfloat16), lm_ref[...],
                                 preferred_element_type=jnp.float32)     # (B*S, V)
                logits_ref[0] = logits.reshape(B, S, V).astype(logits_ref.dtype)


# ---- wrapper ----------------------------------------------------------------
def run_fused(sp, x_emb, bias):
    mdl3 = lambda i: (i, 0, 0)
    mdl4 = lambda i: (i, 0, 0, 0)
    return pl.pallas_call(
        fused_kernel,
        out_shape=(jax.ShapeDtypeStruct((NUM_STEPS, B, S, V), jnp.float32),
                   jax.ShapeDtypeStruct((NUM_MODELS, B, S), jnp.float32)),
        grid=(NUM_STEPS,),
        in_specs=[
            pl.BlockSpec((B, S, S), lambda i: (0, 0, 0)),                # additive attn bias (resident)
            pl.BlockSpec((MODELS_PER_BLOCK, B, S, H), mdl4),             # embedded inputs (bf16)
            pl.BlockSpec((MODELS_PER_BLOCK, H, WH_WIDTH), mdl3),         # packed Wq|Wk|Wv|Wo|W1
            pl.BlockSpec((MODELS_PER_BLOCK, F, H), mdl3),                # W2
            pl.BlockSpec((MODELS_PER_BLOCK, 1, VEC_WIDTH), mdl3),        # packed b1|b2|score
            pl.BlockSpec((H, V), lambda i: (0, 0)),                      # policy LM head (resident)
        ],
        out_specs=[
            pl.BlockSpec((1, B, S, V), mdl4),                            # logits (only step 0 valid)
            pl.BlockSpec((MODELS_PER_BLOCK, B, S), mdl3),                # per-model value scores
        ],
        compiler_params=pltpu.CompilerParams(
            dimension_semantics=("parallel",)),                          # v7x: 2 TCs, 1 step each
    )(bias, x_emb, sp["w_h"], sp["w2"], sp["vec"], sp["lm_head"])


# ---- parameter construction (deterministic, synthetic) ----------------------
def make_model_params(key, with_lm_head, with_score):
    ks = jax.random.split(key, 12)
    init = lambda k, shape: (0.02 * jax.random.normal(k, shape)).astype(jnp.float32)
    p = {
        "tok_emb": init(ks[0], (V, H)),
        "pos_emb": init(ks[1], (S, H)),
        "wq": init(ks[2], (H, H)),
        "wk": init(ks[3], (H, H)),
        "wv": init(ks[4], (H, H)),
        "wo": init(ks[5], (H, H)),
        "w1": init(ks[6], (H, F)),
        "b1": jnp.zeros((1, F), jnp.float32),
        "w2": init(ks[7], (F, H)),
        "b2": jnp.zeros((1, H), jnp.float32),
    }
    if with_lm_head:
        p["lm_head"] = init(ks[8], (H, V))
    if with_score:
        # HF sequence-classification score head: Linear(H, 1, bias=False)
        p["score"] = init(ks[9], (1, H))
    return p


def stack_params(policy_p, main_p, c1_p, c2_p):
    """Stack / pack the four models' weights on a leading model axis."""
    ps = [policy_p, main_p, c1_p, c2_p]
    stk = lambda name, dt: jnp.stack([p[name] for p in ps]).astype(dt)

    # All matrices whose input dim is H, concatenated along the output (lane) axis.
    w_h = jnp.stack([
        jnp.concatenate([p["wq"], p["wk"], p["wv"], p["wo"], p["w1"]], axis=1)
        for p in ps
    ]).astype(jnp.bfloat16)                                   # (4, H, 768)

    zero_score = jnp.zeros((1, H), jnp.float32)               # policy has no score head
    score_heads = [zero_score, main_p["score"], c1_p["score"], c2_p["score"]]
    vec = jnp.stack([
        jnp.concatenate([p["b1"], p["b2"], s], axis=1)
        for p, s in zip(ps, score_heads)
    ]).astype(jnp.float32)                                    # (4, 1, 512)

    return {
        "tok_emb": stk("tok_emb", jnp.float32),               # (4, V, H)
        "pos_emb": stk("pos_emb", jnp.float32),               # (4, S, H)
        "w_h": w_h,                                           # (4, H, 3H+H+F) bf16
        "w2": stk("w2", jnp.bfloat16),                        # (4, F, H)
        "vec": vec,                                           # (4, 1, F+2H) f32
        "lm_head": policy_p["lm_head"].astype(jnp.bfloat16),  # (H, V)
    }


# ---- PolicyAndValueWrapper.forward equivalent -------------------------------
def policy_and_value_forward(all_params, input_ids, attention_mask, position_ids):
    sp = stack_params(*all_params)

    # Embedding gathers stay in plain JAX (no clean Pallas gather at this size).
    x_emb = (jnp.take(sp["tok_emb"], input_ids, axis=1)
             + jnp.take(sp["pos_emb"], position_ids, axis=1)).astype(jnp.bfloat16)  # (4,B,S,H)

    # Additive attention bias (causal + key padding), built once in the wrapper.
    causal = jnp.tril(jnp.ones((S, S), dtype=jnp.bool_))
    keep = causal[None, :, :] & (attention_mask[:, None, :] > 0)
    bias = jnp.where(keep, 0.0, NEG_INF).astype(jnp.float32)                         # (B, S, S)

    logits_all, scores_all = run_fused(sp, x_emb, bias)

    # TODO(synk): the original returns the full HF policy ModelOutput object;
    # here the policy output is represented by its token logits.
    policy_logits = logits_all[0]                             # (B, S, V)  (grid step 0, model 0)
    value_logits = scores_all[1][..., None]                   # (B, S, 1)  main value model
    constraint_logits = [scores_all[2][..., None],            # constraint vm1
                         scores_all[3][..., None]]            # constraint vm2
    return policy_logits, value_logits, constraint_logits


if __name__ == "__main__":
    root = jax.random.PRNGKey(0)
    k_pol, k_main, k_c1, k_c2, k_ids = jax.random.split(root, 5)

    policy_params = make_model_params(k_pol, with_lm_head=True, with_score=False)
    main_params = make_model_params(k_main, with_lm_head=False, with_score=True)
    c1_params = make_model_params(k_c1, with_lm_head=False, with_score=True)
    c2_params = make_model_params(k_c2, with_lm_head=False, with_score=True)

    input_ids = jax.random.randint(k_ids, (B, S), 0, V, dtype=jnp.int32)
    attention_mask = jnp.ones((B, S), jnp.int32).at[1, S - 2:].set(0)  # pad tail of row 1
    position_ids = jnp.broadcast_to(jnp.arange(S, dtype=jnp.int32)[None, :], (B, S))

    fwd = jax.jit(policy_and_value_forward)
    policy_logits, value_logits, constraint_logits = fwd(
        (policy_params, main_params, c1_params, c2_params),
        input_ids, attention_mask, position_ids)

    jax.block_until_ready((policy_logits, value_logits, constraint_logits))

    assert policy_logits.shape == (B, S, V)
    assert value_logits.shape == (B, S, 1)
    assert len(constraint_logits) == 2
    assert constraint_logits[0].shape == (B, S, 1)
    assert constraint_logits[1].shape == (B, S, 1)
    assert bool(jnp.all(jnp.isfinite(policy_logits)))
    assert bool(jnp.all(jnp.isfinite(value_logits)))
    assert bool(jnp.all(jnp.isfinite(constraint_logits[0])))
    assert bool(jnp.all(jnp.isfinite(constraint_logits[1])))
    print("KERNEL_OK")
</pallas_src>

<mosaic_0001>
module attributes {stable_mosaic.version = 11 : i64} {
  func.func @fused_kernel(%arg0: i32, %arg1: memref<2x8x8xf32, #tpu.memory_space<vmem>>, %arg2: memref<2x2x8x128xbf16, #tpu.memory_space<vmem>>, %arg3: memref<2x128x768xbf16, #tpu.memory_space<vmem>>, %arg4: memref<2x256x128xbf16, #tpu.memory_space<vmem>>, %arg5: memref<2x1x512xf32, #tpu.memory_space<vmem>>, %arg6: memref<128x256xbf16, #tpu.memory_space<vmem>>, %arg7: memref<1x2x8x256xf32, #tpu.memory_space<vmem>>, %arg8: memref<2x2x8xf32, #tpu.memory_space<vmem>>) attributes {dimension_semantics = [#tpu.dimension_semantics<parallel>], iteration_bounds = array<i64: 2>, scalar_prefetch = 0 : i64, scratch_operands = 0 : i64, tpu.core_type = #tpu.core_type<tc>, window_params = [{pipeline_mode = #tpu.pipeline_mode<synchronous>, transform_indices = @transform_0, window_bounds = array<i64: 2, 8, 8>}, {transform_indices = @transform_1, window_bounds = array<i64: 2, 2, 8, 128>}, {transform_indices = @transform_2, window_bounds = array<i64: 2, 128, 768>}, {transform_indices = @transform_3, window_bounds = array<i64: 2, 256, 128>}, {transform_indices = @transform_4, window_bounds = array<i64: 2, 1, 512>}, {pipeline_mode = #tpu.pipeline_mode<synchronous>, transform_indices = @transform_5, window_bounds = array<i64: 128, 256>}, {transform_indices = @transform_6, window_bounds = array<i64: 1, 2, 8, 256>}, {transform_indices = @transform_7, window_bounds = array<i64: 2, 2, 8>}]} {
    %c0 = arith.constant 0 : index
    %c0_0 = arith.constant 0 : index
    %c0_1 = arith.constant 0 : index
    %0 = vector.load %arg1[%c0, %c0_0, %c0_1] : memref<2x8x8xf32, #tpu.memory_space<vmem>>, vector<2x8x8xf32>
    %c0_2 = arith.constant 0 : index
    %c0_3 = arith.constant 0 : index
    %c0_4 = arith.constant 0 : index
    %c0_5 = arith.constant 0 : index
    %1 = vector.load %arg2[%c0_2, %c0_3, %c0_4, %c0_5] : memref<2x2x8x128xbf16, #tpu.memory_space<vmem>>, vector<1x2x8x128xbf16>
    %2 = vector.shape_cast %1 : vector<1x2x8x128xbf16> to vector<2x8x128xbf16>
    %3 = arith.extf %2 : vector<2x8x128xbf16> to vector<2x8x128xf32>
    %4 = vector.shape_cast %3 : vector<2x8x128xf32> to vector<16x128xf32>
    %c0_6 = arith.constant 0 : index
    %c0_7 = arith.constant 0 : index
    %c0_8 = arith.constant 0 : index
    %5 = vector.load %arg3[%c0_6, %c0_7, %c0_8] : memref<2x128x768xbf16, #tpu.memory_space<vmem>>, vector<1x128x384xbf16>
    %6 = vector.shape_cast %5 : vector<1x128x384xbf16> to vector<128x384xbf16>
    %c0_9 = arith.constant 0 : index
    %c0_10 = arith.constant 0 : index
    %c384 = arith.constant 384 : index
    %7 = vector.load %arg3[%c0_9, %c0_10, %c384] : memref<2x128x768xbf16, #tpu.memory_space<vmem>>, vector<1x128x128xbf16>
    %8 = vector.shape_cast %7 : vector<1x128x128xbf16> to vector<128x128xbf16>
    %c0_11 = arith.constant 0 : index
    %c0_12 = arith.constant 0 : index
    %c512 = arith.constant 512 : index
    %9 = vector.load %arg3[%c0_11, %c0_12, %c512] : memref<2x128x768xbf16, #tpu.memory_space<vmem>>, vector<1x128x256xbf16>
    %10 = vector.shape_cast %9 : vector<1x128x256xbf16> to vector<128x256xbf16>
    %c0_13 = arith.constant 0 : index
    %c0_14 = arith.constant 0 : index
    %c0_15 = arith.constant 0 : index
    %11 = vector.load %arg5[%c0_13, %c0_14, %c0_15] : memref<2x1x512xf32, #tpu.memory_space<vmem>>, vector<1x1x256xf32>
    %12 = vector.shape_cast %11 : vector<1x1x256xf32> to vector<1x256xf32>
    %c0_16 = arith.constant 0 : index
    %c0_17 = arith.constant 0 : index
    %c256 = arith.constant 256 : index
    %13 = vector.load %arg5[%c0_16, %c0_17, %c256] : memref<2x1x512xf32, #tpu.memory_space<vmem>>, vector<1x1x128xf32>
    %14 = vector.shape_cast %13 : vector<1x1x128xf32> to vector<1x128xf32>
    %c0_18 = arith.constant 0 : index
    %c0_19 = arith.constant 0 : index
    %c384_20 = arith.constant 384 : index
    %15 = vector.load %arg5[%c0_18, %c0_19, %c384_20] : memref<2x1x512xf32, #tpu.memory_space<vmem>>, vector<1x1x128xf32>
    %16 = vector.shape_cast %15 : vector<1x1x128xf32> to vector<1x128xf32>
    %cst = arith.constant dense<0.000000e+00> : vector<16xf32>
    %17 = vector.multi_reduction <add>, %4, %cst [1] : vector<16x128xf32> to vector<16xf32>
    %18 = vector.shape_cast %17 : vector<16xf32> to vector<16x1xf32>
    %cst_21 = arith.constant 1.280000e+02 : f32
    %19 = vector.broadcast %cst_21 : f32 to vector<16x1xf32>
    %20 = arith.divf %18, %19 : vector<16x1xf32>
    %21 = vector.broadcast %20 : vector<16x1xf32> to vector<16x128xf32>
    %22 = arith.subf %4, %21 : vector<16x128xf32>
    %23 = arith.mulf %22, %22 : vector<16x128xf32>
    %cst_22 = arith.constant dense<0.000000e+00> : vector<16xf32>
    %24 = vector.multi_reduction <add>, %23, %cst_22 [1] : vector<16x128xf32> to vector<16xf32>
    %25 = vector.shape_cast %24 : vector<16xf32> to vector<16x1xf32>
    %cst_23 = arith.constant 1.280000e+02 : f32
    %26 = vector.broadcast %cst_23 : f32 to vector<16x1xf32>
    %27 = arith.divf %25, %26 : vector<16x1xf32>
    %28 = vector.broadcast %20 : vector<16x1xf32> to vector<16x128xf32>
    %29 = arith.subf %4, %28 : vector<16x128xf32>
    %cst_24 = arith.constant 9.99999974E-6 : f32
    %30 = vector.broadcast %cst_24 : f32 to vector<16x1xf32>
    %31 = arith.addf %27, %30 : vector<16x1xf32>
    %32 = math.rsqrt %31 : vector<16x1xf32>
    %33 = vector.broadcast %32 : vector<16x1xf32> to vector<16x128xf32>
    %34 = arith.mulf %29, %33 : vector<16x128xf32>
    %35 = arith.truncf %34 : vector<16x128xf32> to vector<16x128xbf16>
    %cst_25 = arith.constant dense<0.000000e+00> : vector<16x384xf32>
    %36 = tpu.matmul %35, %6, %cst_25 {dimension_numbers = #tpu.dot_dimension_numbers<[1], [0], [0], [1], [0, 0, 1, 1], [], []>} : vector<16x128xbf16>, vector<128x384xbf16>, vector<16x384xf32> -> vector<16x384xf32>
    %37 = vector.extract_strided_slice %36 {offsets = [0, 0], sizes = [16, 128], strides = [1, 1]} : vector<16x384xf32> to vector<16x128xf32>
    %38 = vector.shape_cast %37 : vector<16x128xf32> to vector<2x8x128xf32>
    %39 = vector.extract_strided_slice %36 {offsets = [0, 128], sizes = [16, 128], strides = [1, 1]} : vector<16x384xf32> to vector<16x128xf32>
    %40 = vector.shape_cast %39 : vector<16x128xf32> to vector<2x8x128xf32>
    %41 = vector.extract_strided_slice %36 {offsets = [0, 256], sizes = [16, 128], strides = [1, 1]} : vector<16x384xf32> to vector<16x128xf32>
    %42 = vector.shape_cast %41 : vector<16x128xf32> to vector<2x8x128xf32>
    %43 = arith.truncf %38 : vector<2x8x128xf32> to vector<2x8x128xbf16>
    %44 = arith.truncf %40 : vector<2x8x128xf32> to vector<2x8x128xbf16>
    "tpu.trace_start"() <{level = 10 : i32, message = "bqd,bkd->bqk"}> : () -> ()
    %cst_26 = arith.constant dense<0.000000e+00> : vector<2x8x8xf32>
    %45 = tpu.matmul %43, %44, %cst_26 {dimension_numbers = #tpu.dot_dimension_numbers<[2], [2], [1], [1], [0, 0, 0, 1, 1, 1], [0], [0]>} : vector<2x8x128xbf16>, vector<2x8x128xbf16>, vector<2x8x8xf32> -> vector<2x8x8xf32>
    "tpu.trace_stop"() : () -> ()
    %cst_27 = arith.constant 0.0883883461 : f32
    %46 = vector.broadcast %cst_27 : f32 to vector<2x8x8xf32>
    %47 = arith.mulf %45, %46 : vector<2x8x8xf32>
    %48 = arith.addf %47, %0 : vector<2x8x8xf32>
    %cst_28 = arith.constant dense<0xFF800000> : vector<2x8xf32>
    %49 = vector.multi_reduction <maximumf>, %48, %cst_28 [2] : vector<2x8x8xf32> to vector<2x8xf32>
    %50 = vector.shape_cast %49 : vector<2x8xf32> to vector<2x8x1xf32>
    %51 = vector.broadcast %50 : vector<2x8x1xf32> to vector<2x8x8xf32>
    %52 = arith.subf %48, %51 : vector<2x8x8xf32>
    %53 = math.exp %52 : vector<2x8x8xf32>
    %cst_29 = arith.constant dense<0.000000e+00> : vector<2x8xf32>
    %54 = vector.multi_reduction <add>, %53, %cst_29 [2] : vector<2x8x8xf32> to vector<2x8xf32>
    %55 = vector.shape_cast %54 : vector<2x8xf32> to vector<2x8x1xf32>
    %56 = tpu.reciprocal %55 {approx = true} : vector<2x8x1xf32> -> vector<2x8x1xf32>
    %57 = vector.broadcast %56 : vector<2x8x1xf32> to vector<2x8x8xf32>
    %58 = arith.mulf %53, %57 : vector<2x8x8xf32>
    %59 = arith.truncf %58 : vector<2x8x8xf32> to vector<2x8x8xbf16>
    %60 = arith.truncf %42 : vector<2x8x128xf32> to vector<2x8x128xbf16>
    "tpu.trace_start"() <{level = 10 : i32, message = "bqk,bkd->bqd"}> : () -> ()
    %cst_30 = arith.constant dense<0.000000e+00> : vector<2x8x128xf32>
    %61 = tpu.matmul %59, %60, %cst_30 {dimension_numbers = #tpu.dot_dimension_numbers<[2], [1], [1], [2], [0, 0, 0, 1, 1, 2], [0], [0]>} : vector<2x8x8xbf16>, vector<2x8x128xbf16>, vector<2x8x128xf32> -> vector<2x8x128xf32>
    "tpu.trace_stop"() : () -> ()
    %62 = vector.shape_cast %61 : vector<2x8x128xf32> to vector<16x128xf32>
    %63 = arith.truncf %62 : vector<16x128xf32> to vector<16x128xbf16>
    %cst_31 = arith.constant dense<0.000000e+00> : vector<16x128xf32>
    %64 = tpu.matmul %63, %8, %cst_31 {dimension_numbers = #tpu.dot_dimension_numbers<[1], [0], [0], [1], [0, 0, 1, 1], [], []>} : vector<16x128xbf16>, vector<128x128xbf16>, vector<16x128xf32> -> vector<16x128xf32>
    %65 = arith.addf %4, %64 : vector<16x128xf32>
    %cst_32 = arith.constant dense<0.000000e+00> : vector<16xf32>
    %66 = vector.multi_reduction <add>, %65, %cst_32 [1] : vector<16x128xf32> to vector<16xf32>
    %67 = vector.shape_cast %66 : vector<16xf32> to vector<16x1xf32>
    %cst_33 = arith.constant 1.280000e+02 : f32
    %68 = vector.broadcast %cst_33 : f32 to vector<16x1xf32>
    %69 = arith.divf %67, %68 : vector<16x1xf32>
    %70 = vector.broadcast %69 : vector<16x1xf32> to vector<16x128xf32>
    %71 = arith.subf %65, %70 : vector<16x128xf32>
    %72 = arith.mulf %71, %71 : vector<16x128xf32>
    %cst_34 = arith.constant dense<0.000000e+00> : vector<16xf32>
    %73 = vector.multi_reduction <add>, %72, %cst_34 [1] : vector<16x128xf32> to vector<16xf32>
    %74 = vector.shape_cast %73 : vector<16xf32> to vector<16x1xf32>
    %cst_35 = arith.constant 1.280000e+02 : f32
    %75 = vector.broadcast %cst_35 : f32 to vector<16x1xf32>
    %76 = arith.divf %74, %75 : vector<16x1xf32>
    %77 = vector.broadcast %69 : vector<16x1xf32> to vector<16x128xf32>
    %78 = arith.subf %65, %77 : vector<16x128xf32>
    %cst_36 = arith.constant 9.99999974E-6 : f32
    %79 = vector.broadcast %cst_36 : f32 to vector<16x1xf32>
    %80 = arith.addf %76, %79 : vector<16x1xf32>
    %81 = math.rsqrt %80 : vector<16x1xf32>
    %82 = vector.broadcast %81 : vector<16x1xf32> to vector<16x128xf32>
    %83 = arith.mulf %78, %82 : vector<16x128xf32>
    %84 = arith.truncf %83 : vector<16x128xf32> to vector<16x128xbf16>
    %cst_37 = arith.constant dense<0.000000e+00> : vector<16x256xf32>
    %85 = tpu.matmul %84, %10, %cst_37 {dimension_numbers = #tpu.dot_dimension_numbers<[1], [0], [0], [1], [0, 0, 1, 1], [], []>} : vector<16x128xbf16>, vector<128x256xbf16>, vector<16x256xf32> -> vector<16x256xf32>
    %86 = vector.broadcast %12 : vector<1x256xf32> to vector<16x256xf32>
    %87 = arith.addf %85, %86 : vector<16x256xf32>
    %88 = arith.mulf %87, %87 : vector<16x256xf32>
    %89 = arith.mulf %87, %88 : vector<16x256xf32>
    %cst_38 = arith.constant 4.471500e-02 : f32
    %90 = vector.broadcast %cst_38 : f32 to vector<16x256xf32>
    %91 = arith.mulf %90, %89 : vector<16x256xf32>
    %92 = arith.addf %87, %91 : vector<16x256xf32>
    %cst_39 = arith.constant 0.797884583 : f32
    %93 = vector.broadcast %cst_39 : f32 to vector<16x256xf32>
    %94 = arith.mulf %93, %92 : vector<16x256xf32>
    %95 = math.tanh %94 : vector<16x256xf32>
    %cst_40 = arith.constant 1.000000e+00 : f32
    %96 = vector.broadcast %cst_40 : f32 to vector<16x256xf32>
    %97 = arith.addf %96, %95 : vector<16x256xf32>
    %cst_41 = arith.constant 5.000000e-01 : f32
    %98 = vector.broadcast %cst_41 : f32 to vector<16x256xf32>
    %99 = arith.mulf %98, %97 : vector<16x256xf32>
    %100 = arith.mulf %87, %99 : vector<16x256xf32>
    %101 = arith.truncf %100 : vector<16x256xf32> to vector<16x256xbf16>
    %c0_42 = arith.constant 0 : index
    %c0_43 = arith.constant 0 : index
    %c0_44 = arith.constant 0 : index
    %102 = vector.load %arg4[%c0_42, %c0_43, %c0_44] : memref<2x256x128xbf16, #tpu.memory_space<vmem>>, vector<1x256x128xbf16>
    %103 = vector.shape_cast %102 : vector<1x256x128xbf16> to vector<256x128xbf16>
    %cst_45 = arith.constant dense<0.000000e+00> : vector<16x128xf32>
    %104 = tpu.matmul %101, %103, %cst_45 {dimension_numbers = #tpu.dot_dimension_numbers<[1], [0], [0], [1], [0, 0, 1, 1], [], []>} : vector<16x256xbf16>, vector<256x128xbf16>, vector<16x128xf32> -> vector<16x128xf32>
    %105 = arith.addf %65, %104 : vector<16x128xf32>
    %106 = vector.broadcast %14 : vector<1x128xf32> to vector<16x128xf32>
    %107 = arith.addf %105, %106 : vector<16x128xf32>
    %108 = vector.shape_cast %107 : vector<16x128xf32> to vector<2x8x128xf32>
    %109 = vector.shape_cast %16 : vector<1x128xf32> to vector<1x1x128xf32>
    %110 = vector.broadcast %109 : vector<1x1x128xf32> to vector<2x8x128xf32>
    %111 = arith.mulf %108, %110 : vector<2x8x128xf32>
    %cst_46 = arith.constant dense<0.000000e+00> : vector<2x8xf32>
    %112 = vector.multi_reduction <add>, %111, %cst_46 [2] : vector<2x8x128xf32> to vector<2x8xf32>
    %c0_47 = arith.constant 0 : index
    %c0_48 = arith.constant 0 : index
    %c0_49 = arith.constant 0 : index
    %113 = vector.load %arg8[%c0_47, %c0_48, %c0_49] : memref<2x2x8xf32, #tpu.memory_space<vmem>>, vector<1x2x8xf32>
    %114 = vector.shape_cast %113 : vector<1x2x8xf32> to vector<2x8xf32>
    %115 = vector.shape_cast %112 : vector<2x8xf32> to vector<1x2x8xf32>
    tpu.vector_store %arg8[%c0_47, %c0_48, %c0_49], %115 {strides = array<i32>} : memref<2x2x8xf32, #tpu.memory_space<vmem>>, vector<1x2x8xf32>,
    %c0_i32 = arith.constant 0 : i32
    %116 = arith.cmpi eq, %arg0, %c0_i32 : i32
    %117 = arith.extui %116 : i1 to i32
    %c0_i32_50 = arith.constant 0 : i32
    %118 = arith.cmpi ne, %117, %c0_i32_50 : i32
    scf.if %118 {
      %234 = arith.truncf %107 : vector<16x128xf32> to vector<16x128xbf16>
      %c0_102 = arith.constant 0 : index
      %c0_103 = arith.constant 0 : index
      %235 = vector.load %arg6[%c0_102, %c0_103] : memref<128x256xbf16, #tpu.memory_space<vmem>>, vector<128x256xbf16>
      %cst_104 = arith.constant dense<0.000000e+00> : vector<16x256xf32>
      %236 = tpu.matmul %234, %235, %cst_104 {dimension_numbers = #tpu.dot_dimension_numbers<[1], [0], [0], [1], [0, 0, 1, 1], [], []>} : vector<16x128xbf16>, vector<128x256xbf16>, vector<16x256xf32> -> vector<16x256xf32>
      %237 = vector.shape_cast %236 : vector<16x256xf32> to vector<2x8x256xf32>
      %c0_105 = arith.constant 0 : index
      %c0_106 = arith.constant 0 : index
      %c0_107 = arith.constant 0 : index
      %c0_108 = arith.constant 0 : index
      %238 = vector.load %arg7[%c0_105, %c0_106, %c0_107, %c0_108] : memref<1x2x8x256xf32, #tpu.memory_space<vmem>>, vector<1x2x8x256xf32>
      %239 = vector.shape_cast %238 : vector<1x2x8x256xf32> to vector<2x8x256xf32>
      %240 = vector.shape_cast %237 : vector<2x8x256xf32> to vector<1x2x8x256xf32>
      tpu.vector_store %arg7[%c0_105, %c0_106, %c0_107, %c0_108], %240 {strides = array<i32>} : memref<1x2x8x256xf32, #tpu.memory_space<vmem>>, vector<1x2x8x256xf32>,
    } else {
    }
    %c1 = arith.constant 1 : index
    %c0_51 = arith.constant 0 : index
    %c0_52 = arith.constant 0 : index
    %c0_53 = arith.constant 0 : index
    %119 = vector.load %arg2[%c1, %c0_51, %c0_52, %c0_53] : memref<2x2x8x128xbf16, #tpu.memory_space<vmem>>, vector<1x2x8x128xbf16>
    %120 = vector.shape_cast %119 : vector<1x2x8x128xbf16> to vector<2x8x128xbf16>
    %121 = arith.extf %120 : vector<2x8x128xbf16> to vector<2x8x128xf32>
    %122 = vector.shape_cast %121 : vector<2x8x128xf32> to vector<16x128xf32>
    %c1_54 = arith.constant 1 : index
    %c0_55 = arith.constant 0 : index
    %c0_56 = arith.constant 0 : index
    %123 = vector.load %arg3[%c1_54, %c0_55, %c0_56] : memref<2x128x768xbf16, #tpu.memory_space<vmem>>, vector<1x128x384xbf16>
    %124 = vector.shape_cast %123 : vector<1x128x384xbf16> to vector<128x384xbf16>
    %c1_57 = arith.constant 1 : index
    %c0_58 = arith.constant 0 : index
    %c384_59 = arith.constant 384 : index
    %125 = vector.load %arg3[%c1_57, %c0_58, %c384_59] : memref<2x128x768xbf16, #tpu.memory_space<vmem>>, vector<1x128x128xbf16>
    %126 = vector.shape_cast %125 : vector<1x128x128xbf16> to vector<128x128xbf16>
    %c1_60 = arith.constant 1 : index
    %c0_61 = arith.constant 0 : index
    %c512_62 = arith.constant 512 : index
    %127 = vector.load %arg3[%c1_60, %c0_61, %c512_62] : memref<2x128x768xbf16, #tpu.memory_space<vmem>>, vector<1x128x256xbf16>
    %128 = vector.shape_cast %127 : vector<1x128x256xbf16> to vector<128x256xbf16>
    %c1_63 = arith.constant 1 : index
    %c0_64 = arith.constant 0 : index
    %c0_65 = arith.constant 0 : index
    %129 = vector.load %arg5[%c1_63, %c0_64, %c0_65] : memref<2x1x512xf32, #tpu.memory_space<vmem>>, vector<1x1x256xf32>
    %130 = vector.shape_cast %129 : vector<1x1x256xf32> to vector<1x256xf32>
    %c1_66 = arith.constant 1 : index
    %c0_67 = arith.constant 0 : index
    %c256_68 = arith.constant 256 : index
    %131 = vector.load %arg5[%c1_66, %c0_67, %c256_68] : memref<2x1x512xf32, #tpu.memory_space<vmem>>, vector<1x1x128xf32>
    %132 = vector.shape_cast %131 : vector<1x1x128xf32> to vector<1x128xf32>
    %c1_69 = arith.constant 1 : index
    %c0_70 = arith.constant 0 : index
    %c384_71 = arith.constant 384 : index
    %133 = vector.load %arg5[%c1_69, %c0_70, %c384_71] : memref<2x1x512xf32, #tpu.memory_space<vmem>>, vector<1x1x128xf32>
    %134 = vector.shape_cast %133 : vector<1x1x128xf32> to vector<1x128xf32>
    %cst_72 = arith.constant dense<0.000000e+00> : vector<16xf32>
    %135 = vector.multi_reduction <add>, %122, %cst_72 [1] : vector<16x128xf32> to vector<16xf32>
    %136 = vector.shape_cast %135 : vector<16xf32> to vector<16x1xf32>
    %cst_73 = arith.constant 1.280000e+02 : f32
    %137 = vector.broadcast %cst_73 : f32 to vector<16x1xf32>
    %138 = arith.divf %136, %137 : vector<16x1xf32>
    %139 = vector.broadcast %138 : vector<16x1xf32> to vector<16x128xf32>
    %140 = arith.subf %122, %139 : vector<16x128xf32>
    %141 = arith.mulf %140, %140 : vector<16x128xf32>
    %cst_74 = arith.constant dense<0.000000e+00> : vector<16xf32>
    %142 = vector.multi_reduction <add>, %141, %cst_74 [1] : vector<16x128xf32> to vector<16xf32>
    %143 = vector.shape_cast %142 : vector<16xf32> to vector<16x1xf32>
    %cst_75 = arith.constant 1.280000e+02 : f32
    %144 = vector.broadcast %cst_75 : f32 to vector<16x1xf32>
    %145 = arith.divf %143, %144 : vector<16x1xf32>
    %146 = vector.broadcast %138 : vector<16x1xf32> to vector<16x128xf32>
    %147 = arith.subf %122, %146 : vector<16x128xf32>
    %cst_76 = arith.constant 9.99999974E-6 : f32
    %148 = vector.broadcast %cst_76 : f32 to vector<16x1xf32>
    %149 = arith.addf %145, %148 : vector<16x1xf32>
    %150 = math.rsqrt %149 : vector<16x1xf32>
    %151 = vector.broadcast %150 : vector<16x1xf32> to vector<16x128xf32>
    %152 = arith.mulf %147, %151 : vector<16x128xf32>
    %153 = arith.truncf %152 : vector<16x128xf32> to vector<16x128xbf16>
    %cst_77 = arith.constant dense<0.000000e+00> : vector<16x384xf32>
    %154 = tpu.matmul %153, %124, %cst_77 {dimension_numbers = #tpu.dot_dimension_numbers<[1], [0], [0], [1], [0, 0, 1, 1], [], []>} : vector<16x128xbf16>, vector<128x384xbf16>, vector<16x384xf32> -> vector<16x384xf32>
    %155 = vector.extract_strided_slice %154 {offsets = [0, 0], sizes = [16, 128], strides = [1, 1]} : vector<16x384xf32> to vector<16x128xf32>
    %156 = vector.shape_cast %155 : vector<16x128xf32> to vector<2x8x128xf32>
    %157 = vector.extract_strided_slice %154 {offsets = [0, 128], sizes = [16, 128], strides = [1, 1]} : vector<16x384xf32> to vector<16x128xf32>
    %158 = vector.shape_cast %157 : vector<16x128xf32> to vector<2x8x128xf32>
    %159 = vector.extract_strided_slice %154 {offsets = [0, 256], sizes = [16, 128], strides = [1, 1]} : vector<16x384xf32> to vector<16x128xf32>
    %160 = vector.shape_cast %159 : vector<16x128xf32> to vector<2x8x128xf32>
    %161 = arith.truncf %156 : vector<2x8x128xf32> to vector<2x8x128xbf16>
    %162 = arith.truncf %158 : vector<2x8x128xf32> to vector<2x8x128xbf16>
    "tpu.trace_start"() <{level = 10 : i32, message = "bqd,bkd->bqk"}> : () -> ()
    %cst_78 = arith.constant dense<0.000000e+00> : vector<2x8x8xf32>
    %163 = tpu.matmul %161, %162, %cst_78 {dimension_numbers = #tpu.dot_dimension_numbers<[2], [2], [1], [1], [0, 0, 0, 1, 1, 1], [0], [0]>} : vector<2x8x128xbf16>, vector<2x8x128xbf16>, vector<2x8x8xf32> -> vector<2x8x8xf32>
    "tpu.trace_stop"() : () -> ()
    %cst_79 = arith.constant 0.0883883461 : f32
    %164 = vector.broadcast %cst_79 : f32 to vector<2x8x8xf32>
    %165 = arith.mulf %163, %164 : vector<2x8x8xf32>
    %166 = arith.addf %165, %0 : vector<2x8x8xf32>
    %cst_80 = arith.constant dense<0xFF800000> : vector<2x8xf32>
    %167 = vector.multi_reduction <maximumf>, %166, %cst_80 [2] : vector<2x8x8xf32> to vector<2x8xf32>
    %168 = vector.shape_cast %167 : vector<2x8xf32> to vector<2x8x1xf32>
    %169 = vector.broadcast %168 : vector<2x8x1xf32> to vector<2x8x8xf32>
    %170 = arith.subf %166, %169 : vector<2x8x8xf32>
    %171 = math.exp %170 : vector<2x8x8xf32>
    %cst_81 = arith.constant dense<0.000000e+00> : vector<2x8xf32>
    %172 = vector.multi_reduction <add>, %171, %cst_81 [2] : vector<2x8x8xf32> to vector<2x8xf32>
    %173 = vector.shape_cast %172 : vector<2x8xf32> to vector<2x8x1xf32>
    %174 = tpu.reciprocal %173 {approx = true} : vector<2x8x1xf32> -> vector<2x8x1xf32>
    %175 = vector.broadcast %174 : vector<2x8x1xf32> to vector<2x8x8xf32>
    %176 = arith.mulf %171, %175 : vector<2x8x8xf32>
    %177 = arith.truncf %176 : vector<2x8x8xf32> to vector<2x8x8xbf16>
    %178 = arith.truncf %160 : vector<2x8x128xf32> to vector<2x8x128xbf16>
    "tpu.trace_start"() <{level = 10 : i32, message = "bqk,bkd->bqd"}> : () -> ()
    %cst_82 = arith.constant dense<0.000000e+00> : vector<2x8x128xf32>
    %179 = tpu.matmul %177, %178, %cst_82 {dimension_numbers = #tpu.dot_dimension_numbers<[2], [1], [1], [2], [0, 0, 0, 1, 1, 2], [0], [0]>} : vector<2x8x8xbf16>, vector<2x8x128xbf16>, vector<2x8x128xf32> -> vector<2x8x128xf32>
    "tpu.trace_stop"() : () -> ()
    %180 = vector.shape_cast %179 : vector<2x8x128xf32> to vector<16x128xf32>
    %181 = arith.truncf %180 : vector<16x128xf32> to vector<16x128xbf16>
    %cst_83 = arith.constant dense<0.000000e+00> : vector<16x128xf32>
    %182 = tpu.matmul %181, %126, %cst_83 {dimension_numbers = #tpu.dot_dimension_numbers<[1], [0], [0], [1], [0, 0, 1, 1], [], []>} : vector<16x128xbf16>, vector<128x128xbf16>, vector<16x128xf32> -> vector<16x128xf32>
    %183 = arith.addf %122, %182 : vector<16x128xf32>
    %cst_84 = arith.constant dense<0.000000e+00> : vector<16xf32>
    %184 = vector.multi_reduction <add>, %183, %cst_84 [1] : vector<16x128xf32> to vector<16xf32>
    %185 = vector.shape_cast %184 : vector<16xf32> to vector<16x1xf32>
    %cst_85 = arith.constant 1.280000e+02 : f32
    %186 = vector.broadcast %cst_85 : f32 to vector<16x1xf32>
    %187 = arith.divf %185, %186 : vector<16x1xf32>
    %188 = vector.broadcast %187 : vector<16x1xf32> to vector<16x128xf32>
    %189 = arith.subf %183, %188 : vector<16x128xf32>
    %190 = arith.mulf %189, %189 : vector<16x128xf32>
    %cst_86 = arith.constant dense<0.000000e+00> : vector<16xf32>
    %191 = vector.multi_reduction <add>, %190, %cst_86 [1] : vector<16x128xf32> to vector<16xf32>
    %192 = vector.shape_cast %191 : vector<16xf32> to vector<16x1xf32>
    %cst_87 = arith.constant 1.280000e+02 : f32
    %193 = vector.broadcast %cst_87 : f32 to vector<16x1xf32>
    %194 = arith.divf %192, %193 : vector<16x1xf32>
    %195 = vector.broadcast %187 : vector<16x1xf32> to vector<16x128xf32>
    %196 = arith.subf %183, %195 : vector<16x128xf32>
    %cst_88 = arith.constant 9.99999974E-6 : f32
    %197 = vector.broadcast %cst_88 : f32 to vector<16x1xf32>
    %198 = arith.addf %194, %197 : vector<16x1xf32>
    %199 = math.rsqrt %198 : vector<16x1xf32>
    %200 = vector.broadcast %199 : vector<16x1xf32> to vector<16x128xf32>
    %201 = arith.mulf %196, %200 : vector<16x128xf32>
    %202 = arith.truncf %201 : vector<16x128xf32> to vector<16x128xbf16>
    %cst_89 = arith.constant dense<0.000000e+00> : vector<16x256xf32>
    %203 = tpu.matmul %202, %128, %cst_89 {dimension_numbers = #tpu.dot_dimension_numbers<[1], [0], [0], [1], [0, 0, 1, 1], [], []>} : vector<16x128xbf16>, vector<128x256xbf16>, vector<16x256xf32> -> vector<16x256xf32>
    %204 = vector.broadcast %130 : vector<1x256xf32> to vector<16x256xf32>
    %205 = arith.addf %203, %204 : vector<16x256xf32>
    %206 = arith.mulf %205, %205 : vector<16x256xf32>
    %207 = arith.mulf %205, %206 : vector<16x256xf32>
    %cst_90 = arith.constant 4.471500e-02 : f32
    %208 = vector.broadcast %cst_90 : f32 to vector<16x256xf32>
    %209 = arith.mulf %208, %207 : vector<16x256xf32>
    %210 = arith.addf %205, %209 : vector<16x256xf32>
    %cst_91 = arith.constant 0.797884583 : f32
    %211 = vector.broadcast %cst_91 : f32 to vector<16x256xf32>
    %212 = arith.mulf %211, %210 : vector<16x256xf32>
    %213 = math.tanh %212 : vector<16x256xf32>
    %cst_92 = arith.constant 1.000000e+00 : f32
    %214 = vector.broadcast %cst_92 : f32 to vector<16x256xf32>
    %215 = arith.addf %214, %213 : vector<16x256xf32>
    %cst_93 = arith.constant 5.000000e-01 : f32
    %216 = vector.broadcast %cst_93 : f32 to vector<16x256xf32>
    %217 = arith.mulf %216, %215 : vector<16x256xf32>
    %218 = arith.mulf %205, %217 : vector<16x256xf32>
    %219 = arith.truncf %218 : vector<16x256xf32> to vector<16x256xbf16>
    %c1_94 = arith.constant 1 : index
    %c0_95 = arith.constant 0 : index
    %c0_96 = arith.constant 0 : index
    %220 = vector.load %arg4[%c1_94, %c0_95, %c0_96] : memref<2x256x128xbf16, #tpu.memory_space<vmem>>, vector<1x256x128xbf16>
    %221 = vector.shape_cast %220 : vector<1x256x128xbf16> to vector<256x128xbf16>
    %cst_97 = arith.constant dense<0.000000e+00> : vector<16x128xf32>
    %222 = tpu.matmul %219, %221, %cst_97 {dimension_numbers = #tpu.dot_dimension_numbers<[1], [0], [0], [1], [0, 0, 1, 1], [], []>} : vector<16x256xbf16>, vector<256x128xbf16>, vector<16x128xf32> -> vector<16x128xf32>
    %223 = arith.addf %183, %222 : vector<16x128xf32>
    %224 = vector.broadcast %132 : vector<1x128xf32> to vector<16x128xf32>
    %225 = arith.addf %223, %224 : vector<16x128xf32>
    %226 = vector.shape_cast %225 : vector<16x128xf32> to vector<2x8x128xf32>
    %227 = vector.shape_cast %134 : vector<1x128xf32> to vector<1x1x128xf32>
    %228 = vector.broadcast %227 : vector<1x1x128xf32> to vector<2x8x128xf32>
    %229 = arith.mulf %226, %228 : vector<2x8x128xf32>
    %cst_98 = arith.constant dense<0.000000e+00> : vector<2x8xf32>
    %230 = vector.multi_reduction <add>, %229, %cst_98 [2] : vector<2x8x128xf32> to vector<2x8xf32>
    %c1_99 = arith.constant 1 : index
    %c0_100 = arith.constant 0 : index
    %c0_101 = arith.constant 0 : index
    %231 = vector.load %arg8[%c1_99, %c0_100, %c0_101] : memref<2x2x8xf32, #tpu.memory_space<vmem>>, vector<1x2x8xf32>
    %232 = vector.shape_cast %231 : vector<1x2x8xf32> to vector<2x8xf32>
    %233 = vector.shape_cast %230 : vector<2x8xf32> to vector<1x2x8xf32>
    tpu.vector_store %arg8[%c1_99, %c0_100, %c0_101], %233 {strides = array<i32>} : memref<2x2x8xf32, #tpu.memory_space<vmem>>, vector<1x2x8xf32>,
    return
  }
  func.func @transform_0(%arg0: i32) -> (i32, i32, i32) {
    %c0_i32 = arith.constant 0 : i32
    %c0_i32_0 = arith.constant 0 : i32
    %c0_i32_1 = arith.constant 0 : i32
    %c0_i32_2 = arith.constant 0 : i32
    return %c0_i32, %c0_i32_0, %c0_i32_1 : i32, i32, i32
  }
  func.func @transform_1(%arg0: i32) -> (i32, i32, i32, i32) {
    %c0_i32 = arith.constant 0 : i32
    %c0_i32_0 = arith.constant 0 : i32
    %c0_i32_1 = arith.constant 0 : i32
    %c0_i32_2 = arith.constant 0 : i32
    return %arg0, %c0_i32, %c0_i32_0, %c0_i32_1 : i32, i32, i32, i32
  }
  func.func @transform_2(%arg0: i32) -> (i32, i32, i32) {
    %c0_i32 = arith.constant 0 : i32
    %c0_i32_0 = arith.constant 0 : i32
    %c0_i32_1 = arith.constant 0 : i32
    return %arg0, %c0_i32, %c0_i32_0 : i32, i32, i32
  }
  func.func @transform_3(%arg0: i32) -> (i32, i32, i32) {
    %c0_i32 = arith.constant 0 : i32
    %c0_i32_0 = arith.constant 0 : i32
    %c0_i32_1 = arith.constant 0 : i32
    return %arg0, %c0_i32, %c0_i32_0 : i32, i32, i32
  }
  func.func @transform_4(%arg0: i32) -> (i32, i32, i32) {
    %c0_i32 = arith.constant 0 : i32
    %c0_i32_0 = arith.constant 0 : i32
    %c0_i32_1 = arith.constant 0 : i32
    return %arg0, %c0_i32, %c0_i32_0 : i32, i32, i32
  }
  func.func @transform_5(%arg0: i32) -> (i32, i32) {
    %c0_i32 = arith.constant 0 : i32
    %c0_i32_0 = arith.constant 0 : i32
    %c0_i32_1 = arith.constant 0 : i32
    return %c0_i32, %c0_i32_0 : i32, i32
  }
  func.func @transform_6(%arg0: i32) -> (i32, i32, i32, i32) {
    %c0_i32 = arith.constant 0 : i32
    %c0_i32_0 = arith.constant 0 : i32
    %c0_i32_1 = arith.constant 0 : i32
    %c0_i32_2 = arith.constant 0 : i32
    return %arg0, %c0_i32, %c0_i32_0, %c0_i32_1 : i32, i32, i32, i32
  }
  func.func @transform_7(%arg0: i32) -> (i32, i32, i32) {
    %c0_i32 = arith.constant 0 : i32
    %c0_i32_0 = arith.constant 0 : i32
    %c0_i32_1 = arith.constant 0 : i32
    return %arg0, %c0_i32, %c0_i32_0 : i32, i32, i32
  }
}

</mosaic_0001>

<bundles_post_ra>
// kernel: policy_and_value_forward.1
= control target key start
LH: loop header
LB: loop body
LE: loop exit
PB: predicated region body
PF: predicated region fallthrough
CT: control target
= control target key end

     0   :  { %s3473_s24 = smov 0   ;;  %s3892_s0 = inlined_call_operand.vmem [shape: f32[2,8,8], index: 0, kind: input, shape index: {}]   ;;  %s3893_s1 = inlined_call_operand.vmem [shape: bf16[4,2,8,128], index: 1, kind: input, shape index: {}]   ;;  %s3894_s2 = inlined_call_operand.vmem [shape: bf16[4,128,768], index: 2, kind: input, shape index: {}]   ;;  %s3895_s3 = inlined_call_operand.vmem [shape: bf16[4,256,128], index: 3, kind: input, shape index: {}]   ;;  %s3896_s4 = inlined_call_operand.vmem [shape: f32[4,1,512], index: 4, kind: input, shape index: {}]   ;;  %s3897_s5 = inlined_call_operand.vmem [shape: bf16[128,256], index: 5, kind: input, shape index: {}]   ;;  %s3898_s6 = inlined_call_operand.vmem [shape: f32[2,2,8,256], index: 6, kind: output, shape index: {0}]   ;;  %s3899_s7 = inlined_call_operand.vmem [shape: f32[4,2,8], index: 7, kind: output, shape index: {1}]  }
   0x1 LB: > { %s3479_s25 = sadd.s32 4294967295, %s3427_s24   ;;  %p2668_p0 = scmp.ge.s32.totalorder %s3427_s24, 1  ;;  %s3427_s24 = sphi %s3473_s24, %s18_s24  }
   0x2   : > { %p277_p1 = scmp.lt.s32.totalorder %s3427_s24, 3 }
   0x4   : > { %p278_p2 = pnand %p2668_p0, %p277_p1 }
   0x5   : > { %s2669_s26 = sshll.u32 (!%p278_p2), %s3479_s25, 1  ;;  %p359_p4 = scmp.lt.s32.totalorder (!%p278_p2), %s3479_s25, 1  ;;  %v3429_v5 = vmov (!%p278_p2), 0.0   ;;  %v3430_v34 = vmov (!%p278_p2), 0   ;;  %vm3431_vm0 = vmmov (!%p278_p2), 0   ;;  %vm798_vm1 = vcmask (!%p278_p2), 1043456  }
   0x6   : > { %281 = sbr.rel (%p278_p2) target bundleno = 4952 (0x1358), region = 44  ;;  %p333_p3 = scmp.lt.s32.totalorder (!%p278_p2), %s2669_s26, 3  ;;  %3048 = vmatprep.subr.bf16.mxu1 (!%p278_p2), %v3429_v5  ;;  %628 = vmatprep.mubr.bf16.mxu0 (!%p278_p2), %v3430_v34  ;;  %vm768_vm2 = vcmask (!%p278_p2), 64512   ;;  %vm1378_vm3 = vcmask (!%p278_p2), 1041409   ;;  %vm1381_vm4 = vcmask (!%p278_p2), 58368  }
   0x7   : > { %3064 = vmatprep.mubr.msk.bf16.mxu1 (!%p278_p2), %vm3431_vm0, %v3429_v5  ;;  %p2751_p5 = scmp.ne.s32.totalorder (!%p278_p2), %s3479_s25, 0 }
   0xd   : > { %s3901_s26 = smov (!%p333_p3, %s2669_s26), 3 }
   0xe   : > { %s2940_s27 = sshll.u32 %s3901_s26, 3  ;;  %s3176_s28 = smul.u32 384, %s3901_s26 }
   0xf   : > { %s3491_s8 = scalar_lea.vmem %s3893_s1, %s2940_s27  ;;  %s2941_s12 = sshll.u32 %s3901_s26, 7 }
  0x10   : > { %s3496_s11 = scalar_lea.vmem %s3894_s2, %s3176_s28  ;;  %v2944_v0 = vld [vmem:[%s3491_s8] sm:$0xff]   ;;  %s3509_s15 = scalar_lea.vmem %s3895_s3, %s2941_s12 }
  0x11   : > { %v3499_v1 = vunpack.c.l.bf16 %v2944_v0  ;;  %v3502_v2 = vunpack.c.h.bf16 %v2944_v0  ;;  %v3189_v3 = vld [vmem:[%s3496_s11 + $0x4] ss:$24 sps:$4 sm:$0xff]   ;;  %v3191_v4 = vld [vmem:[%s3496_s11] ss:$24 sps:$4 sm:$0xff]   ;;  %v3193_v7 = vld [vmem:[%s3496_s11 + $0x34] ss:$24 sps:$4 sm:$0xff]  }
  0x12   : > { %v3192_v6 = vld [vmem:[%s3496_s11 + $0x8] ss:$24 sps:$4 sm:$0xff]   ;;  %s360_s16 = scalar_select %p359_p4, %s3479_s25, 1  ;;  %596 = vmatprep.subr.bf16.mxu0 %v3189_v3  ;;  %v3196_v9 = vld [vmem:[%s3496_s11 + $0x38] ss:$24 sps:$4 sm:$0xff]  }
  0x13   : > { %444 = vadd.xlane.f32.xlu0 %v3499_v1  ;;  %v3195_v8 = vld [vmem:[%s3496_s11 + $0x30] ss:$24 sps:$4 sm:$0xff]   ;;  %v3197_v10 = vld [vmem:[%s3496_s11 + $0x64] ss:$24 sps:$4 sm:$0xff]   ;;  %597 = vmatpush1.bf16.msra.mxu0 %v3191_v4  ;;  %v3199_v19 = vld [vmem:[%s3496_s11 + $0x60] ss:$24 sps:$4 sm:$0xff]  }
  0x14   : > { %3049 = vmatpush3.bf16.msra.mxu1 %v3192_v6  ;;  %s2942_s17 = sshll.u32 %s360_s16, 5  ;;  %598 = vmatprep.subr.bf16.mxu0 %v3193_v7  ;;  %v3200_v20 = vld [vmem:[%s3496_s11 + $0x68] ss:$24 sps:$4 sm:$0xff]   ;;  %v3201_v21 = vld [vmem:[%s3496_s11 + $0x94] ss:$24 sps:$4 sm:$0xff]   ;;  %s2678_s28 = sshll.u32 %s3901_s26, 2 }
  0x15   : > { %3050 = vmatprep.subr.bf16.mxu1 %v3429_v5  ;;  %s3525_s20 = scalar_lea.vmem %s3898_s6, %s2942_s17  ;;  %v3203_v22 = vld [vmem:[%s3496_s11 + $0x90] ss:$24 sps:$4 sm:$0xff]   ;;  %v3205_v24 = vld [vmem:[%s3496_s11 + $0xc4] ss:$24 sps:$4 sm:$0xff]   ;;  %v3207_v25 = vld [vmem:[%s3496_s11 + $0xc0] ss:$24 sps:$4 sm:$0xff]   ;;  %s3663_s9 = scalar_lea.vmem %s3896_s4, %s2678_s28 }
  0x16   : > { %v3204_v23 = vld [vmem:[%s3496_s11 + $0x98] ss:$24 sps:$4 sm:$0xff]   ;;  %v3208_v26 = vld [vmem:[%s3496_s11 + $0xc8] ss:$24 sps:$4 sm:$0xff]   ;;  %v3209_v27 = vld [vmem:[%s3496_s11 + $0xf4] ss:$24 sps:$4 sm:$0xff]  }
  0x17   : > { %446 = vadd.xlane.f32.xlu0 %v3502_v2  ;;  %599 = vmatpush1.bf16.msra.mxu0 %v3195_v8  ;;  %v3211_v28 = vld [vmem:[%s3496_s11 + $0xf0] ss:$24 sps:$4 sm:$0xff]   ;;  %v3213_v30 = vld [vmem:[%s3496_s11 + $0x124] ss:$24 sps:$4 sm:$0xff]   ;;  %v3215_v31 = vld [vmem:[%s3496_s11 + $0x120] ss:$24 sps:$4 sm:$0xff]  }
  0x18   : > { %3051 = vmatpush3.bf16.msra.mxu1 %v3196_v9  ;;  %600 = vmatprep.subr.bf16.mxu0 %v3197_v10  ;;  %v3212_v29 = vld [vmem:[%s3496_s11 + $0xf8] ss:$24 sps:$4 sm:$0xff]   ;;  %v3216_v32 = vld [vmem:[%s3496_s11 + $0x128] ss:$24 sps:$4 sm:$0xff]   ;;  %v3217_v33 = vld [vmem:[%s3496_s11 + $0x154] ss:$24 sps:$4 sm:$0xff]  }
  0x19   : > { %3052 = vmatprep.subr.bf16.mxu1 %v3429_v5  ;;  %v3219_v35 = vld [vmem:[%s3496_s11 + $0x150] ss:$24 sps:$4 sm:$0xff]   ;;  %v3580_v3 = vld [vmem:[%s3892_s0] sm:$0xff]  ;;  %s2682_s10 = sshll.u32 %s3901_s26, 1 }
  0x1a   : > { %v3220_v36 = vld [vmem:[%s3496_s11 + $0x158] ss:$24 sps:$4 sm:$0xff]   ;;  %s3685_s14 = scalar_lea.vmem %s3899_s7, %s2682_s10 }
  0x1b   : > { %601 = vmatpush1.bf16.msra.mxu0 %v3199_v19 }
  0x1c   : > { %3053 = vmatpush3.bf16.msra.mxu1 %v3200_v20  ;;  %602 = vmatprep.subr.bf16.mxu0 %v3201_v21 }
  0x1d   : > { %3054 = vmatprep.subr.bf16.mxu1 %v3429_v5 }
  0x1f   : > { %603 = vmatpush1.bf16.msra.mxu0 %v3203_v22 }
  0x20   : > { %3055 = vmatpush3.bf16.msra.mxu1 %v3204_v23  ;;  %604 = vmatprep.subr.bf16.mxu0 %v3205_v24 }
  0x21   : > { %3056 = vmatprep.subr.bf16.mxu1 %v3429_v5 }
  0x23   : > { %605 = vmatpush1.bf16.msra.mxu0 %v3207_v25 }
  0x24   : > { %3057 = vmatpush3.bf16.msra.mxu1 %v3208_v26  ;;  %606 = vmatprep.subr.bf16.mxu0 %v3209_v27 }
  0x25   : > { %3058 = vmatprep.subr.bf16.mxu1 %v3429_v5 }
  0x27   : > { %607 = vmatpush1.bf16.msra.mxu0 %v3211_v28 }
  0x28   : > { %3059 = vmatpush3.bf16.msra.mxu1 %v3212_v29  ;;  %608 = vmatprep.subr.bf16.mxu0 %v3213_v30  ;;  %v3221_v29 = vld [vmem:[%s3496_s11 + $0xc] ss:$24 sps:$4 sm:$0xff]   ;;  %v3222_v30 = vld [vmem:[%s3496_s11 + $0x3c] ss:$24 sps:$4 sm:$0xff]  }
  0x29   : > { %3060 = vmatprep.subr.bf16.mxu1 %v3429_v5 }
  0x2b   : > { %609 = vmatpush1.bf16.msra.mxu0 %v3215_v31  ;;  %v3223_v31 = vld [vmem:[%s3496_s11 + $0x6c] ss:$24 sps:$4 sm:$0xff]  }
  0x2c   : > { %3061 = vmatpush3.bf16.msra.mxu1 %v3216_v32  ;;  %610 = vmatprep.subr.bf16.mxu0 %v3217_v33  ;;  %v3224_v32 = vld [vmem:[%s3496_s11 + $0x9c] ss:$24 sps:$4 sm:$0xff]   ;;  %v3225_v33 = vld [vmem:[%s3496_s11 + $0xcc] ss:$24 sps:$4 sm:$0xff]  }
  0x2d   : > { %3062 = vmatprep.subr.bf16.mxu1 %v3429_v5 }
  0x2f   : > { %611 = vmatpush1.bf16.msra.mxu0 %v3219_v35 }
  0x30   : > { %3063 = vmatpush3.bf16.msra.mxu1 %v3220_v36  ;;  %3092 = vmatprep.subr.bf16.mxu0 %v3429_v5 }
  0x31   : > { %3068 = vmatprep.subr.bf16.mxu1 %v3429_v5 }
  0xa0   : > { %v445_v11 = vpop.xlane.xlu0 %444 }
  0xa1   : > { %v449_v12 = vmul.f32 0.0078125, %v445_v11 }
  0xa3   : > { %v3529_v13 = vsub.f32 %v3499_v1, %v449_v12  ;;  %v3587_v12 = vld [vmem:[%s3892_s0 + $0x8] sm:$0xff] }
  0xa4   : > { %v447_v14 = vpop.xlane.xlu0 %446 }
  0xa5   : > { %v450_v15 = vmul.f32 0.0078125, %v447_v14  ;;  %v453_v16 = vmul.f32 %v3529_v13, %v3529_v13 }
  0xa7   : > { %v452_v17 = vsub.f32 %v3502_v2, %v450_v15  ;;  %455 = vadd.xlane.f32.xlu1 %v453_v16 }
  0xa9   : > { %v454_v18 = vmul.f32 %v452_v17, %v452_v17 }
  0xab   : > { %457 = vadd.xlane.f32.xlu1 %v454_v18 }
 0x134   : > { %v456_v37 = vpop.xlane.xlu1 %455 }
 0x135   : > { %v459_v38 = vmul.f32 0.0078125, %v456_v37 }
 0x137   : > { %v461_v39 = vadd.f32 1e-05, %v459_v38 }
 0x138   : > { %v458_v40 = vpop.xlane.xlu1 %457 }
 0x139   : > { %v460_v41 = vmul.f32 0.0078125, %v458_v40  ;;  %3269 = vrsqrt.f32 %v461_v39 }
 0x13b   : > { %v462_v42 = vadd.f32 1e-05, %v460_v41 }
 0x13d   : > { %3271 = vrsqrt.f32 %v462_v42 }
 0x143   : > { %v3270_v43 = vpop.eup %3269 }
 0x144   : > { %v465_v45 = vmul.f32 %v3270_v43, %v3529_v13  ;;  %v3226_v43 = vld [vmem:[%s3496_s11 + $0xfc] ss:$24 sps:$4 sm:$0xff]  }
 0x147   : > { %v3272_v44 = vpop.eup %3271 }
 0x148   : > { %v466_v46 = vmul.f32 %v3272_v44, %v452_v17  ;;  %v3227_v44 = vld [vmem:[%s3496_s11 + $0x12c] ss:$24 sps:$4 sm:$0xff]  }
 0x14a   : > { %v467_v47 = vpack.c.bf16 %v466_v46, %v465_v45  ;;  %v3228_v45 = vld [vmem:[%s3496_s11 + $0x15c] ss:$24 sps:$4 sm:$0xff]  }
 0x14c   : > { %629 = vmatmul.mubr.bf16.vlgmr.msra.gmra.mrb[0].mxu0 %v467_v47  ;;  %3065 = vmatmul.mubr.bf16.vlgmr.msra.gmra.mrb[0].mxu1 %v467_v47 }
 0x14d   : > { %3070 = vmatprep.mubr.msk.bf16.mxu1 %vm3431_vm0, %v3429_v5  ;;  %3108 = vmatprep.mubr.msk.bf16.mxu0 %vm3431_vm0, %v3429_v5 }
 0x14e   : > { %3093 = vmatpush3.bf16.msra.mxu0 %v3221_v29 }
 0x14f   : > { %3094 = vmatprep.subr.bf16.mxu0 %v3429_v5 }
 0x152   : > { %3095 = vmatpush3.bf16.msra.mxu0 %v3222_v30 }
 0x153   : > { %3096 = vmatprep.subr.bf16.mxu0 %v3429_v5 }
 0x156   : > { %3097 = vmatpush3.bf16.msra.mxu0 %v3223_v31 }
 0x157   : > { %3098 = vmatprep.subr.bf16.mxu0 %v3429_v5 }
 0x15a   : > { %3099 = vmatpush3.bf16.msra.mxu0 %v3224_v32 }
 0x15b   : > { %3100 = vmatprep.subr.bf16.mxu0 %v3429_v5 }
 0x15e   : > { %3101 = vmatpush3.bf16.msra.mxu0 %v3225_v33 }
 0x15f   : > { %3102 = vmatprep.subr.bf16.mxu0 %v3429_v5 }
 0x162   : > { %3103 = vmatpush3.bf16.msra.mxu0 %v3226_v43  ;;  %v3260_v43 = vld [vmem:[%s3509_s15 + $0x18] sm:$0xff]  }
 0x163   : > { %3104 = vmatprep.subr.bf16.mxu0 %v3429_v5 }
 0x166   : > { %3105 = vmatpush3.bf16.msra.mxu0 %v3227_v44  ;;  %v3261_v44 = vld [vmem:[%s3509_s15 + $0x60] sm:$0xff]  }
 0x167   : > { %3106 = vmatprep.subr.bf16.mxu0 %v3429_v5 }
 0x16a   : > { %3107 = vmatpush3.bf16.msra.mxu0 %v3228_v45  ;;  %v3262_v45 = vld [vmem:[%s3509_s15 + $0x20] sm:$0xff]  }
 0x21f   : > { %v630_v48 = vpop.f32.mrb[0].mxu0  ;;  %v673_v49 = vpop.f32.mrb[0].mxu1 }
 0x220   : > { %v632_v50 = vpop.f32.mrb[1].mxu0  ;;  %v3066_v51 = vpop.f32.mrb[1].mxu1  ;;  %v680_v59 = vpack.c.bf16 %v630_v48, %v630_v48  ;;  %v793_v61 = vpack.c.bf16 %v673_v49, %v673_v49 }
 0x221   : > { %v682_v52 = vpack.c.bf16 %v632_v50, %v632_v50  ;;  %v634_v53 = vpop.f32.mrb[2].mxu0  ;;  %v676_v54 = vpop.f32.mrb[2].mxu1 }
 0x222   : > { %v794_v55 = vpack.c.bf16 %v676_v54, %v676_v54  ;;  %v636_v56 = vpop.f32.mrb[3].mxu0  ;;  %v3067_v57 = vpop.f32.mrb[3].mxu1  ;;  %v681_v62 = vpack.c.bf16 %v634_v53, %v634_v53  ;;  %v800_v63 = vsel %vm798_vm1, %v793_v61, 0  ;;  %v3229_v61 = vld [vmem:[%s3496_s11 + $0x10] ss:$24 sps:$4 sm:$0xff]  }
 0x223   : > { %3069 = vmatpush3.bf16.xpose.msra.mxu1 %v682_v52  ;;  %v683_v60 = vpack.c.bf16 %v636_v56, %v636_v56 }
 0x224   : > { %v3567_v58 = vsel %vm798_vm1, %v794_v55, 0  ;;  %3074 = vmatprep.subr.bf16.mxu1 %v3429_v5 }
 0x22a   : > { %3071 = vmatmul.mubr.bf16.vlgmr.msra.gmra.mrb[4].mxu1 %v680_v59 }
 0x22b   : > { %3075 = vmatpush3.bf16.xpose.msra.mxu1 %v683_v60  ;;  %3076 = vmatprep.mubr.msk.bf16.mxu1 %vm3431_vm0, %v3429_v5 }
 0x22c   : > { %3080 = vmatprep.subr.bf16.mxu1 %v3429_v5 }
 0x232   : > { %3077 = vmatmul.mubr.bf16.vlgmr.msra.gmra.mrb[8].mxu1 %v681_v62  ;;  %v3231_v62 = vld [vmem:[%s3496_s11 + $0x14] ss:$24 sps:$4 sm:$0xff]  }
 0x233   : > { %3081 = vmatpush3.bf16.msra.mxu1 %v800_v63  ;;  %3082 = vmatprep.mubr.msk.bf16.mxu1 %vm3431_vm0, %v3429_v5  ;;  %v3234_v63 = vld [vmem:[%s3496_s11 + $0x44] ss:$24 sps:$4 sm:$0xff]  }
 0x234   : > { %3086 = vmatprep.subr.bf16.mxu1 %v3429_v5 }
 0x2fd   : > { %v718_v0 = vpop.f32.mrb[4].mxu1 }
 0x2fe   : > { %v764_v4 = vmul.f32 0.088388346, %v718_v0  ;;  %v3072_v6 = vpop.f32.mrb[5].mxu1  ;;  %v3232_v0 = vld [vmem:[%s3496_s11 + $0x40] ss:$24 sps:$4 sm:$0xff]  }
 0x2ff   : > { %v721_v7 = vpop.f32.mrb[6].mxu1 }
 0x300   : > { %v3073_v8 = vpop.f32.mrb[7].mxu1  ;;  %v766_v9 = vadd.f32 %v764_v4, %v3580_v3  ;;  %v3235_v4 = vld [vmem:[%s3496_s11 + $0x70] ss:$24 sps:$4 sm:$0xff]  }
 0x302   : > { %v769_v10 = vsel %vm768_vm2, %v766_v9, -inf }
 0x303   : > { %770 = vmax.xlane.f32.xlu0 %v769_v10 }
 0x305   : > { %v758_v11 = vpop.f32.mrb[8].mxu1 }
 0x306   : > { %v765_v13 = vmul.f32 0.088388346, %v758_v11  ;;  %v3078_v14 = vpop.f32.mrb[9].mxu1 }
 0x307   : > { %v761_v15 = vpop.f32.mrb[10].mxu1  ;;  %v3240_v14 = vld [vmem:[%s3496_s11 + $0xa4] ss:$24 sps:$4 sm:$0xff]  }
 0x308   : > { %v3079_v16 = vpop.f32.mrb[11].mxu1  ;;  %v767_v17 = vadd.f32 %v765_v13, %v3587_v12  ;;  %v3238_v15 = vld [vmem:[%s3496_s11 + $0xa0] ss:$24 sps:$4 sm:$0xff]  }
 0x309   : > { %v3243_v16 = vld [vmem:[%s3496_s11 + $0xd4] ss:$24 sps:$4 sm:$0xff]  }
 0x30a   : > { %v772_v18 = vsel %vm768_vm2, %v767_v17, -inf }
 0x30b   : > { %773 = vmax.xlane.f32.xlu1 %v772_v18  ;;  %v3246_v18 = vld [vmem:[%s3496_s11 + $0x104] ss:$24 sps:$4 sm:$0xff]  }
 0x390   : > { %v771_v19 = vpop.xlane.xlu0 %770 }
 0x391   : > { %v775_v20 = vsub.f32 %v766_v9, %v771_v19  ;;  %v3244_v19 = vld [vmem:[%s3496_s11 + $0x100] ss:$24 sps:$4 sm:$0xff]  }
 0x393   : > { %v777_v21 = vmul.f32 1.442695, %v775_v20  ;;  %v3249_v20 = vld [vmem:[%s3496_s11 + $0x134] ss:$24 sps:$4 sm:$0xff]  }
 0x395   : > { %3273 = vpow2.f32 %v777_v21  ;;  %v3247_v21 = vld [vmem:[%s3496_s11 + $0x130] ss:$24 sps:$4 sm:$0xff]  }
 0x398   : > { %v774_v22 = vpop.xlane.xlu1 %773 }
 0x399   : > { %v776_v23 = vsub.f32 %v767_v17, %v774_v22  ;;  %v3241_v17 = vld [vmem:[%s3496_s11 + $0xd0] ss:$24 sps:$4 sm:$0xff]   ;;  %v3252_v22 = vld [vmem:[%s3496_s11 + $0x164] ss:$24 sps:$4 sm:$0xff]  }
 0x39b   : > { %v779_v24 = vmul.f32 1.442695, %v776_v23  ;;  %v3250_v23 = vld [vmem:[%s3496_s11 + $0x160] ss:$24 sps:$4 sm:$0xff]  }
 0x39d   : > { %3275 = vpow2.f32 %v779_v24 }
 0x39f   : > { %v3274_v25 = vpop.eup %3273 }
 0x3a0   : > { %v781_v26 = vsel %vm768_vm2, %v3274_v25, 0.0 }
 0x3a1   : > { %782 = vadd.xlane.f32.xlu0 %v781_v26 }
 0x3a7   : > { %v3276_v27 = vpop.eup %3275 }
 0x3a8   : > { %v784_v28 = vsel %vm768_vm2, %v3276_v27, 0.0 }
 0x3a9   : > { %785 = vadd.xlane.f32.xlu1 %v784_v28 }
 0x42e   : > { %v783_v35 = vpop.xlane.xlu0 %782 }
 0x42f   : > { %3277 = vrcp.f32 %v783_v35 }
 0x436   : > { %v786_v36 = vpop.xlane.xlu1 %785 }
 0x437   : > { %3279 = vrcp.f32 %v786_v36  ;;  %v3253_v36 = vld [vmem:[%s3509_s15 + $0x40] sm:$0xff]  }
 0x438   : > { %2978 = vmatprep.subr.bf16.mxu0 %v3253_v36 }
 0x439   : > { %v3278_v37 = vpop.eup %3277 }
 0x43a   : > { %v789_v38 = vmul.f32 %v3278_v37, %v3274_v25  ;;  %v3254_v37 = vld [vmem:[%s3509_s15] sm:$0xff]  }
 0x43c   : > { %v791_v39 = vpack.c.bf16 %v789_v38, %v789_v38  ;;  %v3255_v38 = vld [vmem:[%s3509_s15 + $0x48] sm:$0xff]  }
 0x43e   : > { %3083 = vmatmul.mubr.msk.bf16.vlgmr.msra.gmra.mrb[12].mxu1 %vm768_vm2, %v791_v39  ;;  %v3256_v39 = vld [vmem:[%s3509_s15 + $0x8] sm:$0xff]  }
 0x43f   : > { %3087 = vmatpush3.bf16.msra.mxu1 %v3567_v58  ;;  %3088 = vmatprep.mubr.msk.bf16.mxu1 %vm3431_vm0, %v3429_v5 }
 0x440   : > { %1094 = vmatprep.subr.bf16.mxu1 %v3231_v62 }
 0x441   : > { %v3280_v40 = vpop.eup %3279 }
 0x442   : > { %v790_v41 = vmul.f32 %v3280_v40, %v3276_v27  ;;  %v3257_v40 = vld [vmem:[%s3509_s15 + $0x50] sm:$0xff]  }
 0x444   : > { %v792_v42 = vpack.c.bf16 %v790_v41, %v790_v41  ;;  %v3258_v41 = vld [vmem:[%s3509_s15 + $0x10] sm:$0xff]  }
 0x446   : > { %3089 = vmatmul.mubr.msk.bf16.vlgmr.msra.gmra.mrb[16].mxu1 %vm768_vm2, %v792_v42  ;;  %v3259_v42 = vld [vmem:[%s3509_s15 + $0x58] sm:$0xff]  }
 0x447   : > { %1126 = vmatprep.mubr.bf16.mxu1 %v3430_v34  ;;  %1095 = vmatpush1.bf16.msra.mxu1 %v3229_v61 }
 0x448   : > { %1096 = vmatprep.subr.bf16.mxu1 %v3234_v63 }
 0x44b   : > { %1097 = vmatpush1.bf16.msra.mxu1 %v3232_v0 }
 0x511   : > { %v836_v46 = vpop.f32.mrb[12].mxu1 }
 0x512   : > { %v3084_v47 = vpop.f32.mrb[13].mxu1 }
 0x513   : > { %v839_v48 = vpop.f32.mrb[14].mxu1  ;;  %v3264_v47 = vld [vmem:[%s3509_s15 + $0x28] sm:$0xff]  }
 0x514   : > { %v3085_v49 = vpop.f32.mrb[15].mxu1  ;;  %v3265_v48 = vld [vmem:[%s3509_s15 + $0x70] sm:$0xff]  }
 0x515   : > { %v3266_v49 = vld [vmem:[%s3509_s15 + $0x30] sm:$0xff]  }
 0x519   : > { %v882_v50 = vpop.f32.mrb[16].mxu1 }
 0x51a   : > { %v888_v51 = vpack.c.bf16 %v882_v50, %v836_v46  ;;  %v3090_v52 = vpop.f32.mrb[17].mxu1  ;;  %v3263_v46 = vld [vmem:[%s3509_s15 + $0x68] sm:$0xff]   ;;  %v3267_v50 = vld [vmem:[%s3509_s15 + $0x78] sm:$0xff]  }
 0x51b   : > { %v885_v53 = vpop.f32.mrb[18].mxu1  ;;  %v1004_v52 = vlaneseq }
 0x51c   : > { %v3091_v54 = vpop.f32.mrb[19].mxu1  ;;  %3109 = vmatmul.mubr.bf16.vlgmr.msra.gmra.mrb[4].mxu0 %v888_v51  ;;  %v3268_v51 = vld [vmem:[%s3509_s15 + $0x38] sm:$0xff]  }
 0x51d   : > { %2979 = vmatpush3.bf16.msra.mxu0 %v3254_v37  ;;  %v3658_v53 = vshrl.u32 %v1004_v52, 7 }
 0x51e   : > { %2980 = vmatprep.subr.bf16.mxu0 %v3255_v38 }
 0x51f   : > { %v1006_v54 = vsub.s32 0, %v3658_v53 }
 0x521   : > { %2981 = vmatpush3.bf16.msra.mxu0 %v3256_v39 }
 0x522   : > { %2982 = vmatprep.subr.bf16.mxu0 %v3257_v40 }
 0x525   : > { %2983 = vmatpush3.bf16.msra.mxu0 %v3258_v41 }
 0x526   : > { %2984 = vmatprep.subr.bf16.mxu0 %v3259_v42 }
 0x529   : > { %2985 = vmatpush3.bf16.msra.mxu0 %v3260_v43 }
 0x52a   : > { %2986 = vmatprep.subr.bf16.mxu0 %v3261_v44 }
 0x52d   : > { %2987 = vmatpush3.bf16.msra.mxu0 %v3262_v45 }
 0x52e   : > { %2988 = vmatprep.subr.bf16.mxu0 %v3263_v46 }
 0x531   : > { %2989 = vmatpush3.bf16.msra.mxu0 %v3264_v47 }
 0x532   : > { %2990 = vmatprep.subr.bf16.mxu0 %v3265_v48 }
 0x535   : > { %2991 = vmatpush3.bf16.msra.mxu0 %v3266_v49 }
 0x536   : > { %2992 = vmatprep.subr.bf16.mxu0 %v3267_v50 }
 0x539   : > { %2993 = vmatpush3.bf16.msra.mxu0 %v3268_v51 }
 0x5ef   : > { %v971_v55 = vpop.f32.mrb[4].mxu0 }
 0x5f0   : > { %v3615_v56 = vadd.f32 %v3499_v1, %v971_v55  ;;  %v3110_v57 = vpop.f32.mrb[5].mxu0  ;;  %v3237_v1 = vld [vmem:[%s3496_s11 + $0x74] ss:$24 sps:$4 sm:$0xff]   ;;  %v441_v55 = vld [vmem:[%s3663_s9] sm:$0x3] }
 0x5f1   : > { %v974_v58 = vpop.f32.mrb[6].mxu0  ;;  %1098 = vmatprep.subr.bf16.mxu1 %v3237_v1  ;;  %v1010_v57 = vsub.s32 1, %v3658_v53 }
 0x5f2   : > { %v3618_v59 = vadd.f32 %v3502_v2, %v974_v58  ;;  %980 = vadd.xlane.f32.xlu0 %v3615_v56  ;;  %v3111_v60 = vpop.f32.mrb[7].mxu0  ;;  %1099 = vmatpush1.bf16.msra.mxu1 %v3235_v4  ;;  %v1007_v58 = vrot.slane %v441_v55, %v1006_v54 }
 0x5f3   : > { %1100 = vmatprep.subr.bf16.mxu1 %v3240_v14  ;;  %v1011_v60 = vrot.slane %v441_v55, %v1010_v57  ;;  %v2749_v55 = vld [vmem:[%s3663_s9 + $0x2] ss:$0 sm:$0xff] }
 0x5f4   : > { %982 = vadd.xlane.f32.xlu1 %v3618_v59 }
 0x5f6   : > { %1101 = vmatpush1.bf16.msra.mxu1 %v3238_v15 }
 0x5f7   : > { %1102 = vmatprep.subr.bf16.mxu1 %v3243_v16 }
 0x5fa   : > { %1103 = vmatpush1.bf16.msra.mxu1 %v3241_v17 }
 0x5fb   : > { %1104 = vmatprep.subr.bf16.mxu1 %v3246_v18 }
 0x5fe   : > { %1105 = vmatpush1.bf16.msra.mxu1 %v3244_v19 }
 0x5ff   : > { %1106 = vmatprep.subr.bf16.mxu1 %v3249_v20 }
 0x602   : > { %1107 = vmatpush1.bf16.msra.mxu1 %v3247_v21 }
 0x603   : > { %1108 = vmatprep.subr.bf16.mxu1 %v3252_v22 }
 0x606   : > { %1109 = vmatpush1.bf16.msra.mxu1 %v3250_v23 }
 0x67f   : > { %v981_v2 = vpop.xlane.xlu0 %980 }
 0x680   : > { %v984_v6 = vmul.f32 0.0078125, %v981_v2 }
 0x681   : > { %v983_v7 = vpop.xlane.xlu1 %982 }
 0x682   : > { %v986_v8 = vsub.f32 %v3615_v56, %v984_v6  ;;  %v985_v9 = vmul.f32 0.0078125, %v983_v7 }
 0x684   : > { %v987_v10 = vsub.f32 %v3618_v59, %v985_v9  ;;  %v988_v11 = vmul.f32 %v986_v8, %v986_v8 }
 0x686   : > { %990 = vadd.xlane.f32.xlu0 %v988_v11  ;;  %v989_v13 = vmul.f32 %v987_v10, %v987_v10 }
 0x688   : > { %992 = vadd.xlane.f32.xlu1 %v989_v13 }
 0x713   : > { %v991_v24 = vpop.xlane.xlu0 %990 }
 0x714   : > { %v994_v25 = vmul.f32 0.0078125, %v991_v24 }
 0x715   : > { %v993_v26 = vpop.xlane.xlu1 %992 }
 0x716   : > { %v996_v27 = vadd.f32 1e-05, %v994_v25  ;;  %v995_v28 = vmul.f32 0.0078125, %v993_v26 }
 0x718   : > { %3281 = vrsqrt.f32 %v996_v27  ;;  %v997_v29 = vadd.f32 1e-05, %v995_v28 }
 0x71a   : > { %3283 = vrsqrt.f32 %v997_v29 }
 0x722   : > { %v3282_v30 = vpop.eup %3281 }
 0x723   : > { %v1000_v32 = vmul.f32 %v3282_v30, %v986_v8 }
 0x724   : > { %v3284_v31 = vpop.eup %3283 }
 0x725   : > { %v1001_v33 = vmul.f32 %v3284_v31, %v987_v10 }
 0x727   : > { %v1002_v35 = vpack.c.bf16 %v1001_v33, %v1000_v32 }
 0x729   : > { %1127 = vmatmul.mubr.bf16.vlgmr.msra.gmra.mrb[20].mxu1 %v1002_v35 }
 0x7fc   : > { %v1128_v61 = vpop.f32.mrb[20].mxu1 }
 0x7fd   : > { %v1129_v62 = vadd.f32 %v1128_v61, %v1007_v58  ;;  %v1130_v63 = vpop.f32.mrb[21].mxu1  ;;  %v2750_v61 = vld [vmem:[%s3663_s9 + $0x3] ss:$0 sm:$0xff] }
 0x7fe   : > { %v1131_v0 = vadd.f32 %v1130_v63, %v1011_v60  ;;  %v1132_v1 = vpop.f32.mrb[22].mxu1 }
 0x7ff   : > { %v1137_v4 = vmul.f32 %v1129_v62, %v1129_v62  ;;  %v1133_v2 = vadd.f32 %v1132_v1, %v1007_v58  ;;  %v1134_v6 = vpop.f32.mrb[23].mxu1 }
 0x800   : > { %v1138_v7 = vmul.f32 %v1131_v0, %v1131_v0  ;;  %v1135_v8 = vadd.f32 %v1134_v6, %v1011_v60 }
 0x801   : > { %v1141_v9 = vmul.f32 %v1137_v4, %v1129_v62  ;;  %v1139_v10 = vmul.f32 %v1133_v2, %v1133_v2 }
 0x802   : > { %v1142_v11 = vmul.f32 %v1138_v7, %v1131_v0  ;;  %v1140_v13 = vmul.f32 %v1135_v8, %v1135_v8 }
 0x803   : > { %v1145_v14 = vmul.f32 0.044715, %v1141_v9  ;;  %v1143_v15 = vmul.f32 %v1139_v10, %v1133_v2  ;;  %v3293_v9 = vld [vmem:[%s3897_s5 + $0x4] ss:$8 sps:$4 sm:$0xff] (!%p2751_p5)   ;;  %v3295_v10 = vld [vmem:[%s3897_s5] ss:$8 sps:$4 sm:$0xff] (!%p2751_p5)  }
 0x804   : > { %v1146_v16 = vmul.f32 0.044715, %v1142_v11  ;;  %v1144_v17 = vmul.f32 %v1140_v13, %v1135_v8  ;;  %v3432_v11 = vmov (!%p2751_p5), 0   ;;  %1484 = vmatprep.subr.bf16.mxu0 (!%p2751_p5), %v3293_v9  ;;  %v3296_v13 = vld [vmem:[%s3897_s5 + $0x14] ss:$8 sps:$4 sm:$0xff] (!%p2751_p5)  }
 0x805   : > { %v1149_v18 = vadd.f32 %v1145_v14, %v1129_v62  ;;  %v1147_v19 = vmul.f32 0.044715, %v1143_v15  ;;  %v3298_v14 = vld [vmem:[%s3897_s5 + $0x10] ss:$8 sps:$4 sm:$0xff] (!%p2751_p5)   ;;  %v3299_v15 = vld [vmem:[%s3897_s5 + $0x24] ss:$8 sps:$4 sm:$0xff] (!%p2751_p5)  }
 0x806   : > { %v1150_v20 = vadd.f32 %v1146_v16, %v1131_v0  ;;  %v1148_v21 = vmul.f32 0.044715, %v1144_v17  ;;  %v3301_v16 = vld [vmem:[%s3897_s5 + $0x20] ss:$8 sps:$4 sm:$0xff] (!%p2751_p5)   ;;  %v3302_v17 = vld [vmem:[%s3897_s5 + $0x34] ss:$8 sps:$4 sm:$0xff] (!%p2751_p5)  }
 0x807   : > { %v1153_v22 = vmul.f32 0.7978846, %v1149_v18  ;;  %v1151_v23 = vadd.f32 %v1147_v19, %v1133_v2  ;;  %v3304_v18 = vld [vmem:[%s3897_s5 + $0x30] ss:$8 sps:$4 sm:$0xff] (!%p2751_p5)   ;;  %v3305_v19 = vld [vmem:[%s3897_s5 + $0x44] ss:$8 sps:$4 sm:$0xff] (!%p2751_p5)  }
 0x808   : > { %v1154_v24 = vmul.f32 0.7978846, %v1150_v20  ;;  %v1152_v25 = vadd.f32 %v1148_v21, %v1135_v8  ;;  %v3307_v20 = vld [vmem:[%s3897_s5 + $0x40] ss:$8 sps:$4 sm:$0xff] (!%p2751_p5)   ;;  %v3308_v21 = vld [vmem:[%s3897_s5 + $0x54] ss:$8 sps:$4 sm:$0xff] (!%p2751_p5)  }
 0x809   : > { %3285 = vtanh.f32 %v1153_v22  ;;  %v1155_v26 = vmul.f32 0.7978846, %v1151_v23  ;;  %v3310_v22 = vld [vmem:[%s3897_s5 + $0x50] ss:$8 sps:$4 sm:$0xff] (!%p2751_p5)   ;;  %v3311_v23 = vld [vmem:[%s3897_s5 + $0x64] ss:$8 sps:$4 sm:$0xff] (!%p2751_p5)  }
 0x80a   : > { %3287 = vtanh.f32 %v1154_v24  ;;  %v1156_v27 = vmul.f32 0.7978846, %v1152_v25  ;;  %v3313_v24 = vld [vmem:[%s3897_s5 + $0x60] ss:$8 sps:$4 sm:$0xff] (!%p2751_p5)   ;;  %v3314_v25 = vld [vmem:[%s3897_s5 + $0x74] ss:$8 sps:$4 sm:$0xff] (!%p2751_p5)  }
 0x80b   : > { %3289 = vtanh.f32 %v1155_v26  ;;  %v3316_v26 = vld [vmem:[%s3897_s5 + $0x70] ss:$8 sps:$4 sm:$0xff] (!%p2751_p5)  }
 0x80c   : > { %3291 = vtanh.f32 %v1156_v27 }
 0x813   : > { %v3286_v28 = vpop.eup %3285 }
 0x814   : > { %v3288_v29 = vpop.eup %3287  ;;  %v1161_v30 = vadd.f32 1.0, %v3286_v28 }
 0x815   : > { %v3290_v31 = vpop.eup %3289  ;;  %v1162_v32 = vadd.f32 1.0, %v3288_v29 }
 0x816   : > { %v3292_v33 = vpop.eup %3291  ;;  %v1165_v35 = vmul.f32 0.5, %v1161_v30  ;;  %v1163_v36 = vadd.f32 1.0, %v3290_v31 }
 0x817   : > { %v1164_v37 = vadd.f32 1.0, %v3292_v33  ;;  %v1166_v38 = vmul.f32 0.5, %v1162_v32 }
 0x818   : > { %v1167_v39 = vmul.f32 0.5, %v1163_v36  ;;  %v1169_v41 = vmul.f32 %v1165_v35, %v1129_v62 }
 0x819   : > { %v1168_v40 = vmul.f32 0.5, %v1164_v37  ;;  %v1170_v43 = vmul.f32 %v1166_v38, %v1131_v0 }
 0x81a   : > { %v1171_v42 = vmul.f32 %v1167_v39, %v1133_v2  ;;  %v1369_v2 = vand.u32 127, %v1004_v52 }
 0x81b   : > { %v1172_v44 = vmul.f32 %v1168_v40, %v1135_v8 }
 0x81c   : > { %v1173_v45 = vpack.c.bf16 %v1171_v42, %v1169_v41  ;;  %v3678_v6 = vsub.s32 %v1369_v2, %v3658_v53 }
 0x81d   : > { %v1174_v46 = vpack.c.bf16 %v1172_v44, %v1170_v43 }
 0x81f   : > { %1335 = vmatprep.mubr.bf16.mxu0 %v1174_v46 }
 0x820   : > { %1336 = vmatmul.mubr.bf16.vlgmr.msra.gmra.mrb[8].mxu0 %v1173_v45 }
 0x821   : > { %1516 = vmatprep.mubr.bf16.mxu0 (!%p2751_p5), %v3432_v11  ;;  %1485 = vmatpush1.bf16.msra.mxu0 (!%p2751_p5), %v3295_v10 }
 0x822   : > { %1486 = vmatprep.subr.bf16.mxu0 (!%p2751_p5), %v3296_v13 }
 0x825   : > { %1487 = vmatpush1.bf16.msra.mxu0 (!%p2751_p5), %v3298_v14 }
 0x826   : > { %1488 = vmatprep.subr.bf16.mxu0 (!%p2751_p5), %v3299_v15 }
 0x829   : > { %1489 = vmatpush1.bf16.msra.mxu0 (!%p2751_p5), %v3301_v16 }
 0x82a   : > { %1490 = vmatprep.subr.bf16.mxu0 (!%p2751_p5), %v3302_v17 }
 0x82d   : > { %1491 = vmatpush1.bf16.msra.mxu0 (!%p2751_p5), %v3304_v18 }
 0x82e   : > { %1492 = vmatprep.subr.bf16.mxu0 (!%p2751_p5), %v3305_v19 }
 0x831   : > { %1493 = vmatpush1.bf16.msra.mxu0 (!%p2751_p5), %v3307_v20 }
 0x832   : > { %1494 = vmatprep.subr.bf16.mxu0 (!%p2751_p5), %v3308_v21 }
 0x835   : > { %1495 = vmatpush1.bf16.msra.mxu0 (!%p2751_p5), %v3310_v22 }
 0x836   : > { %1496 = vmatprep.subr.bf16.mxu0 (!%p2751_p5), %v3311_v23 }
 0x839   : > { %1497 = vmatpush1.bf16.msra.mxu0 (!%p2751_p5), %v3313_v24 }
 0x83a   : > { %1498 = vmatprep.subr.bf16.mxu0 (!%p2751_p5), %v3314_v25 }
 0x83d   : > { %1499 = vmatpush1.bf16.msra.mxu0 (!%p2751_p5), %v3316_v26 }
 0x8f3   : > { %v2994_v47 = vpop.f32.mrb[8].mxu0 }
 0x8f4   : > { %v2995_v48 = vpop.f32.mrb[9].mxu0 }
 0x8f5   : > { %v2996_v49 = vadd.f32 %v2995_v48, %v2994_v47  ;;  %v2997_v50 = vpop.f32.mrb[10].mxu0 }
 0x8f6   : > { %v2998_v51 = vpop.f32.mrb[11].mxu0 }
 0x8f7   : > { %v1344_v58 = vadd.f32 %v2996_v49, %v3615_v56  ;;  %v2999_v60 = vadd.f32 %v2998_v51, %v2997_v50 }
 0x8f9   : > { %v1345_v62 = vadd.f32 %v2999_v60, %v3618_v59  ;;  %v1352_v63 = vadd.f32 %v2749_v55, %v1344_v58 }
 0x8fb   : > { %v1360_v0 = vmul.f32 %v2750_v61, %v1352_v63  ;;  %v1353_v1 = vadd.f32 %v2749_v55, %v1345_v62 }
 0x8fd   : > { %1362 = vadd.xlane.f32.xlu0 %v1360_v0  ;;  %v1361_v4 = vmul.f32 %v2750_v61, %v1353_v1  ;;  %v1387_v27 = vpack.c.bf16 (!%p2751_p5), %v1353_v1, %v1352_v63 }
 0x8ff   : > { %1364 = vadd.xlane.f32.xlu1 %v1361_v4  ;;  %1517 = vmatmul.mubr.bf16.vlgmr.msra.gmra.mrb[0].mxu0 (!%p2751_p5), %v1387_v27 }
 0x98a   : > { %v1363_v7 = vpop.xlane.xlu0 %1362  ;;  %1386 = sbr.rel (%p2751_p5) target bundleno = 2519 (0x9d7), region = 48 }
 0x98b   : > { %v1373_v56 = vrot.slane %v1363_v7, %v3678_v6 }
 0x98c   : > { %v1365_v8 = vpop.xlane.xlu1 %1364 }
 0x98d   : > { %v1377_v59 = vrot.slane %v1365_v8, %v3678_v6 }
 0x98f   : > { %v1379_v52 = vsel %vm1378_vm3, %v1377_v59, %v1373_v56 }
 0x990   : > { %1382 = vst.msk [vmem:[%s3685_s14] sm:$0x3] %vm1381_vm4, %v1379_v52 }
 0x9d2   : > { %v1518_v28 = vpop.f32.mrb[0].mxu0 }
 0x9d3   : > { %1527 = vst [vmem:[%s3525_s20] sm:$0xff] %v1518_v28  ;;  %v1520_v29 = vpop.f32.mrb[1].mxu0 }
 0x9d4   : > { %1528 = vst [vmem:[%s3525_s20 + $0x8] sm:$0xff] %v1520_v29  ;;  %v1522_v30 = vpop.f32.mrb[2].mxu0 }
 0x9d5   : > { %1529 = vst [vmem:[%s3525_s20 + $0x10] sm:$0xff] %v1522_v30  ;;  %v1524_v31 = vpop.f32.mrb[3].mxu0 }
 0x9d6   : > { %1530 = vst [vmem:[%s3525_s20 + $0x18] sm:$0xff] %v1524_v31 }
 0x9d7 PF: > { %v2951_v32 = vld [vmem:[%s3491_s8 + $0x8] sm:$0xff]   ;;  %3112 = vmatprep.subr.bf16.mxu1 %v3429_v5  ;;  %1788 = vmatprep.mubr.bf16.mxu0 %v3430_v34  ;;  %v3317_v36 = vld [vmem:[%s3496_s11 + $0x184] ss:$24 sps:$4 sm:$0xff]   ;;  %v3319_v37 = vld [vmem:[%s3496_s11 + $0x180] ss:$24 sps:$4 sm:$0xff]  }
 0x9d8   : > { %v3747_v33 = vunpack.c.l.bf16 %v2951_v32  ;;  %3128 = vmatprep.mubr.msk.bf16.mxu1 %vm3431_vm0, %v3429_v5  ;;  %v3752_v35 = vunpack.c.h.bf16 %v2951_v32  ;;  %v3320_v38 = vld [vmem:[%s3496_s11 + $0x188] ss:$24 sps:$4 sm:$0xff]   ;;  %v3321_v39 = vld [vmem:[%s3496_s11 + $0x1b4] ss:$24 sps:$4 sm:$0xff]   ;;  %v3324_v41 = vld [vmem:[%s3496_s11 + $0x1b8] ss:$24 sps:$4 sm:$0xff]   ;;  %1756 = vmatprep.subr.bf16.mxu0 %v3317_v36 }
 0x9d9   : > { %v3323_v40 = vld [vmem:[%s3496_s11 + $0x1b0] ss:$24 sps:$4 sm:$0xff]   ;;  %3113 = vmatpush3.bf16.msra.mxu1 %v3320_v38  ;;  %v3325_v42 = vld [vmem:[%s3496_s11 + $0x1e4] ss:$24 sps:$4 sm:$0xff]   ;;  %1757 = vmatpush1.bf16.msra.mxu0 %v3319_v37  ;;  %v3327_v51 = vld [vmem:[%s3496_s11 + $0x1e0] ss:$24 sps:$4 sm:$0xff]  }
 0x9da   : > { %1605 = vadd.xlane.f32.xlu0 %v3747_v33  ;;  %3114 = vmatprep.subr.bf16.mxu1 %v3429_v5  ;;  %v3328_v55 = vld [vmem:[%s3496_s11 + $0x1e8] ss:$24 sps:$4 sm:$0xff]   ;;  %v3329_v58 = vld [vmem:[%s3496_s11 + $0x214] ss:$24 sps:$4 sm:$0xff]   ;;  %v3332_v61 = vld [vmem:[%s3496_s11 + $0x218] ss:$24 sps:$4 sm:$0xff]  }
 0x9db   : > { %1758 = vmatprep.subr.bf16.mxu0 %v3321_v39  ;;  %v3331_v60 = vld [vmem:[%s3496_s11 + $0x210] ss:$24 sps:$4 sm:$0xff]   ;;  %v3333_v62 = vld [vmem:[%s3496_s11 + $0x244] ss:$24 sps:$4 sm:$0xff]   ;;  %v3335_v63 = vld [vmem:[%s3496_s11 + $0x240] ss:$24 sps:$4 sm:$0xff]  }
 0x9dc   : > { %v3336_v0 = vld [vmem:[%s3496_s11 + $0x248] ss:$24 sps:$4 sm:$0xff]   ;;  %v3337_v1 = vld [vmem:[%s3496_s11 + $0x274] ss:$24 sps:$4 sm:$0xff]   ;;  %v3340_v2 = vld [vmem:[%s3496_s11 + $0x278] ss:$24 sps:$4 sm:$0xff]  }
 0x9dd   : > { %3115 = vmatpush3.bf16.msra.mxu1 %v3324_v41  ;;  %1759 = vmatpush1.bf16.msra.mxu0 %v3323_v40  ;;  %v3339_v4 = vld [vmem:[%s3496_s11 + $0x270] ss:$24 sps:$4 sm:$0xff]   ;;  %v3341_v7 = vld [vmem:[%s3496_s11 + $0x2a4] ss:$24 sps:$4 sm:$0xff]   ;;  %v3343_v8 = vld [vmem:[%s3496_s11 + $0x2a0] ss:$24 sps:$4 sm:$0xff]  }
 0x9de   : > { %1607 = vadd.xlane.f32.xlu0 %v3752_v35  ;;  %3116 = vmatprep.subr.bf16.mxu1 %v3429_v5  ;;  %v3344_v56 = vld [vmem:[%s3496_s11 + $0x2a8] ss:$24 sps:$4 sm:$0xff]   ;;  %v3345_v59 = vld [vmem:[%s3496_s11 + $0x2d4] ss:$24 sps:$4 sm:$0xff]   ;;  %v3348_v9 = vld [vmem:[%s3496_s11 + $0x2d8] ss:$24 sps:$4 sm:$0xff]  }
 0x9df   : > { %1760 = vmatprep.subr.bf16.mxu0 %v3325_v42  ;;  %v3347_v52 = vld [vmem:[%s3496_s11 + $0x2d0] ss:$24 sps:$4 sm:$0xff]  }
 0x9e1   : > { %1761 = vmatpush1.bf16.msra.mxu0 %v3327_v51  ;;  %3117 = vmatpush3.bf16.msra.mxu1 %v3328_v55 }
 0x9e2   : > { %3118 = vmatprep.subr.bf16.mxu1 %v3429_v5  ;;  %1762 = vmatprep.subr.bf16.mxu0 %v3329_v58 }
 0x9e5   : > { %1763 = vmatpush1.bf16.msra.mxu0 %v3331_v60  ;;  %3119 = vmatpush3.bf16.msra.mxu1 %v3332_v61 }
 0x9e6   : > { %3120 = vmatprep.subr.bf16.mxu1 %v3429_v5  ;;  %1764 = vmatprep.subr.bf16.mxu0 %v3333_v62 }
 0x9e9   : > { %1765 = vmatpush1.bf16.msra.mxu0 %v3335_v63  ;;  %3121 = vmatpush3.bf16.msra.mxu1 %v3336_v0 }
 0x9ea   : > { %3122 = vmatprep.subr.bf16.mxu1 %v3429_v5  ;;  %1766 = vmatprep.subr.bf16.mxu0 %v3337_v1 }
 0x9ed   : > { %1767 = vmatpush1.bf16.msra.mxu0 %v3339_v4  ;;  %3123 = vmatpush3.bf16.msra.mxu1 %v3340_v2  ;;  %v3349_v2 = vld [vmem:[%s3496_s11 + $0x18c] ss:$24 sps:$4 sm:$0xff]  }
 0x9ee   : > { %1768 = vmatprep.subr.bf16.mxu0 %v3341_v7  ;;  %3124 = vmatprep.subr.bf16.mxu1 %v3429_v5  ;;  %v3350_v7 = vld [vmem:[%s3496_s11 + $0x1bc] ss:$24 sps:$4 sm:$0xff]  }
 0x9f1   : > { %1769 = vmatpush1.bf16.msra.mxu0 %v3343_v8  ;;  %3125 = vmatpush3.bf16.msra.mxu1 %v3344_v56  ;;  %v3351_v8 = vld [vmem:[%s3496_s11 + $0x1ec] ss:$24 sps:$4 sm:$0xff]   ;;  %v3352_v56 = vld [vmem:[%s3496_s11 + $0x21c] ss:$24 sps:$4 sm:$0xff]  }
 0x9f2   : > { %1770 = vmatprep.subr.bf16.mxu0 %v3345_v59  ;;  %3126 = vmatprep.subr.bf16.mxu1 %v3429_v5  ;;  %v3353_v59 = vld [vmem:[%s3496_s11 + $0x24c] ss:$24 sps:$4 sm:$0xff]  }
 0x9f5   : > { %1771 = vmatpush1.bf16.msra.mxu0 %v3347_v52  ;;  %3127 = vmatpush3.bf16.msra.mxu1 %v3348_v9 }
 0x9f6   : > { %3132 = vmatprep.subr.bf16.mxu1 %v3429_v5  ;;  %3156 = vmatprep.subr.bf16.mxu0 %v3429_v5 }
 0xa67   : > { %v1606_v43 = vpop.xlane.xlu0 %1605 }
 0xa68   : > { %v1609_v44 = vmul.f32 0.0078125, %v1606_v43 }
 0xa6a   : > { %v1611_v45 = vsub.f32 %v3747_v33, %v1609_v44 }
 0xa6b   : > { %v1608_v46 = vpop.xlane.xlu0 %1607 }
 0xa6c   : > { %v1610_v47 = vmul.f32 0.0078125, %v1608_v46  ;;  %v1613_v48 = vmul.f32 %v1611_v45, %v1611_v45 }
 0xa6e   : > { %v1612_v49 = vsub.f32 %v3752_v35, %v1610_v47  ;;  %1615 = vadd.xlane.f32.xlu1 %v1613_v48 }
 0xa70   : > { %v1614_v50 = vmul.f32 %v1612_v49, %v1612_v49 }
 0xa72   : > { %1617 = vadd.xlane.f32.xlu1 %v1614_v50 }
 0xafb   : > { %v1616_v10 = vpop.xlane.xlu1 %1615 }
 0xafc   : > { %v1619_v11 = vmul.f32 0.0078125, %v1616_v10 }
 0xafe   : > { %v1621_v13 = vadd.f32 1e-05, %v1619_v11 }
 0xaff   : > { %v1618_v14 = vpop.xlane.xlu1 %1617 }
 0xb00   : > { %v1620_v15 = vmul.f32 0.0078125, %v1618_v14  ;;  %3397 = vrsqrt.f32 %v1621_v13 }
 0xb02   : > { %v1622_v16 = vadd.f32 1e-05, %v1620_v15 }
 0xb04   : > { %3399 = vrsqrt.f32 %v1622_v16 }
 0xb0a   : > { %v3398_v17 = vpop.eup %3397 }
 0xb0b   : > { %v1625_v19 = vmul.f32 %v3398_v17, %v1611_v45 }
 0xb0e   : > { %v3400_v18 = vpop.eup %3399 }
 0xb0f   : > { %v1626_v20 = vmul.f32 %v3400_v18, %v1612_v49 }
 0xb11   : > { %v1627_v21 = vpack.c.bf16 %v1626_v20, %v1625_v19  ;;  %v3354_v19 = vld [vmem:[%s3496_s11 + $0x27c] ss:$24 sps:$4 sm:$0xff]   ;;  %v3355_v20 = vld [vmem:[%s3496_s11 + $0x2ac] ss:$24 sps:$4 sm:$0xff]  }
 0xb13   : > { %1789 = vmatmul.mubr.bf16.vlgmr.msra.gmra.mrb[0].mxu0 %v1627_v21  ;;  %3129 = vmatmul.mubr.bf16.vlgmr.msra.gmra.mrb[0].mxu1 %v1627_v21  ;;  %v3356_v21 = vld [vmem:[%s3496_s11 + $0x2dc] ss:$24 sps:$4 sm:$0xff]  }
 0xb14   : > { %3134 = vmatprep.mubr.msk.bf16.mxu1 %vm3431_vm0, %v3429_v5  ;;  %3172 = vmatprep.mubr.msk.bf16.mxu0 %vm3431_vm0, %v3429_v5 }
 0xb15   : > { %3157 = vmatpush3.bf16.msra.mxu0 %v3349_v2 }
 0xb16   : > { %3158 = vmatprep.subr.bf16.mxu0 %v3429_v5 }
 0xb19   : > { %3159 = vmatpush3.bf16.msra.mxu0 %v3350_v7 }
 0xb1a   : > { %3160 = vmatprep.subr.bf16.mxu0 %v3429_v5 }
 0xb1d   : > { %3161 = vmatpush3.bf16.msra.mxu0 %v3351_v8 }
 0xb1e   : > { %3162 = vmatprep.subr.bf16.mxu0 %v3429_v5 }
 0xb21   : > { %3163 = vmatpush3.bf16.msra.mxu0 %v3352_v56 }
 0xb22   : > { %3164 = vmatprep.subr.bf16.mxu0 %v3429_v5 }
 0xb25   : > { %3165 = vmatpush3.bf16.msra.mxu0 %v3353_v59 }
 0xb26   : > { %3166 = vmatprep.subr.bf16.mxu0 %v3429_v5 }
 0xb29   : > { %3167 = vmatpush3.bf16.msra.mxu0 %v3354_v19  ;;  %v3388_v19 = vld [vmem:[%s3509_s15 + $0x98] sm:$0xff]  }
 0xb2a   : > { %3168 = vmatprep.subr.bf16.mxu0 %v3429_v5 }
 0xb2d   : > { %3169 = vmatpush3.bf16.msra.mxu0 %v3355_v20  ;;  %v3389_v20 = vld [vmem:[%s3509_s15 + $0xe0] sm:$0xff]  }
 0xb2e   : > { %3170 = vmatprep.subr.bf16.mxu0 %v3429_v5 }
 0xb31   : > { %3171 = vmatpush3.bf16.msra.mxu0 %v3356_v21  ;;  %v3390_v21 = vld [vmem:[%s3509_s15 + $0xa0] sm:$0xff]  }
 0xbe6   : > { %v1790_v22 = vpop.f32.mrb[0].mxu0  ;;  %v1833_v23 = vpop.f32.mrb[0].mxu1 }
 0xbe7   : > { %v1792_v24 = vpop.f32.mrb[1].mxu0  ;;  %v3130_v25 = vpop.f32.mrb[1].mxu1  ;;  %v1840_v31 = vpack.c.bf16 %v1790_v22, %v1790_v22  ;;  %v1952_v36 = vpack.c.bf16 %v1833_v23, %v1833_v23 }
 0xbe8   : > { %v1842_v26 = vpack.c.bf16 %v1792_v24, %v1792_v24  ;;  %v1794_v27 = vpop.f32.mrb[2].mxu0  ;;  %v3794_v28 = vpop.f32.mrb[2].mxu1 }
 0xbe9   : > { %v1796_v29 = vpop.f32.mrb[3].mxu0  ;;  %v3131_v30 = vpop.f32.mrb[3].mxu1  ;;  %v1841_v37 = vpack.c.bf16 %v1794_v27, %v1794_v27  ;;  %v1958_v38 = vsel %vm798_vm1, %v1952_v36, 0  ;;  %v1953_v11 = vpack.c.bf16 %v3794_v28, %v3794_v28 }
 0xbea   : > { %3133 = vmatpush3.bf16.xpose.msra.mxu1 %v1842_v26  ;;  %v1843_v32 = vpack.c.bf16 %v1796_v29, %v1796_v29 }
 0xbeb   : > { %3138 = vmatprep.subr.bf16.mxu1 %v3429_v5  ;;  %v2004_v15 = vsel %vm798_vm1, %v1953_v11, 0  ;;  %v3381_v11 = vld [vmem:[%s3509_s15 + $0xc0] sm:$0xff]  }
 0xbec   : > { %3026 = vmatprep.subr.bf16.mxu0 %v3381_v11 }
 0xbf1   : > { %3135 = vmatmul.mubr.bf16.vlgmr.msra.gmra.mrb[4].mxu1 %v1840_v31 }
 0xbf2   : > { %3139 = vmatpush3.bf16.xpose.msra.mxu1 %v1843_v32  ;;  %3140 = vmatprep.mubr.msk.bf16.mxu1 %vm3431_vm0, %v3429_v5 }
 0xbf3   : > { %3144 = vmatprep.subr.bf16.mxu1 %v3429_v5 }
 0xbf9   : > { %3141 = vmatmul.mubr.bf16.vlgmr.msra.gmra.mrb[8].mxu1 %v1841_v37 }
 0xbfa   : > { %3145 = vmatpush3.bf16.msra.mxu1 %v1958_v38  ;;  %3146 = vmatprep.mubr.msk.bf16.mxu1 %vm3431_vm0, %v3429_v5  ;;  %v3357_v38 = vld [vmem:[%s3496_s11 + $0x190] ss:$24 sps:$4 sm:$0xff]  }
 0xbfb   : > { %3150 = vmatprep.subr.bf16.mxu1 %v3429_v5 }
 0xcc4   : > { %v1878_v39 = vpop.f32.mrb[4].mxu1 }
 0xcc5   : > { %v1924_v40 = vmul.f32 0.088388346, %v1878_v39  ;;  %v3136_v41 = vpop.f32.mrb[5].mxu1  ;;  %v3359_v39 = vld [vmem:[%s3496_s11 + $0x194] ss:$24 sps:$4 sm:$0xff]  }
 0xcc6   : > { %v1881_v42 = vpop.f32.mrb[6].mxu1  ;;  %v3360_v41 = vld [vmem:[%s3496_s11 + $0x1c0] ss:$24 sps:$4 sm:$0xff]  }
 0xcc7   : > { %v1926_v43 = vadd.f32 %v1924_v40, %v3580_v3  ;;  %v3137_v44 = vpop.f32.mrb[7].mxu1  ;;  %v3362_v40 = vld [vmem:[%s3496_s11 + $0x1c4] ss:$24 sps:$4 sm:$0xff]   ;;  %v3363_v42 = vld [vmem:[%s3496_s11 + $0x1f0] ss:$24 sps:$4 sm:$0xff]  }
 0xcc9   : > { %v1928_v45 = vsel %vm768_vm2, %v1926_v43, -inf }
 0xcca   : > { %1929 = vmax.xlane.f32.xlu0 %v1928_v45 }
 0xccc   : > { %v1918_v46 = vpop.f32.mrb[8].mxu1 }
 0xccd   : > { %v1925_v47 = vmul.f32 0.088388346, %v1918_v46  ;;  %v3142_v48 = vpop.f32.mrb[9].mxu1 }
 0xcce   : > { %v1921_v49 = vpop.f32.mrb[10].mxu1 }
 0xccf   : > { %v1927_v50 = vadd.f32 %v1925_v47, %v3587_v12  ;;  %v3143_v51 = vpop.f32.mrb[11].mxu1 }
 0xcd0   : > { %v3366_v51 = vld [vmem:[%s3496_s11 + $0x220] ss:$24 sps:$4 sm:$0xff]  }
 0xcd1   : > { %v1931_v55 = vsel %vm768_vm2, %v1927_v50, -inf }
 0xcd2   : > { %1932 = vmax.xlane.f32.xlu1 %v1931_v55  ;;  %v3371_v55 = vld [vmem:[%s3496_s11 + $0x254] ss:$24 sps:$4 sm:$0xff]  }
 0xd57   : > { %v1930_v58 = vpop.xlane.xlu0 %1929 }
 0xd58   : > { %v1934_v60 = vsub.f32 %v1926_v43, %v1930_v58  ;;  %v3369_v58 = vld [vmem:[%s3496_s11 + $0x250] ss:$24 sps:$4 sm:$0xff]  }
 0xd5a   : > { %v1936_v61 = vmul.f32 1.442695, %v1934_v60  ;;  %v3374_v60 = vld [vmem:[%s3496_s11 + $0x284] ss:$24 sps:$4 sm:$0xff]  }
 0xd5c   : > { %3401 = vpow2.f32 %v1936_v61  ;;  %v3372_v61 = vld [vmem:[%s3496_s11 + $0x280] ss:$24 sps:$4 sm:$0xff]  }
 0xd5f   : > { %v1933_v3 = vpop.xlane.xlu1 %1932 }
 0xd60   : > { %v1935_v62 = vsub.f32 %v1927_v50, %v1933_v3  ;;  %v3368_v50 = vld [vmem:[%s3496_s11 + $0x224] ss:$24 sps:$4 sm:$0xff]   ;;  %v3377_v3 = vld [vmem:[%s3496_s11 + $0x2b4] ss:$24 sps:$4 sm:$0xff]  }
 0xd62   : > { %v1938_v63 = vmul.f32 1.442695, %v1935_v62  ;;  %v3375_v62 = vld [vmem:[%s3496_s11 + $0x2b0] ss:$24 sps:$4 sm:$0xff]  }
 0xd64   : > { %3403 = vpow2.f32 %v1938_v63  ;;  %v3380_v63 = vld [vmem:[%s3496_s11 + $0x2e4] ss:$24 sps:$4 sm:$0xff]  }
 0xd66   : > { %v3402_v0 = vpop.eup %3401 }
 0xd67   : > { %v1940_v1 = vsel %vm768_vm2, %v3402_v0, 0.0 }
 0xd68   : > { %1941 = vadd.xlane.f32.xlu0 %v1940_v1 }
 0xd6e   : > { %v3404_v12 = vpop.eup %3403 }
 0xd6f   : > { %v1943_v4 = vsel %vm768_vm2, %v3404_v12, 0.0 }
 0xd70   : > { %1944 = vadd.xlane.f32.xlu1 %v1943_v4 }
 0xdf5   : > { %v1942_v52 = vpop.xlane.xlu0 %1941 }
 0xdf6   : > { %3405 = vrcp.f32 %v1942_v52 }
 0xdfd   : > { %v1945_v9 = vpop.xlane.xlu1 %1944 }
 0xdfe   : > { %3407 = vrcp.f32 %v1945_v9 }
 0xe00   : > { %v3406_v10 = vpop.eup %3405 }
 0xe01   : > { %v1948_v13 = vmul.f32 %v3406_v10, %v3402_v0  ;;  %v3378_v0 = vld [vmem:[%s3496_s11 + $0x2e0] ss:$24 sps:$4 sm:$0xff]  }
 0xe03   : > { %v1950_v14 = vpack.c.bf16 %v1948_v13, %v1948_v13  ;;  %v3382_v13 = vld [vmem:[%s3509_s15 + $0x80] sm:$0xff]  }
 0xe05   : > { %3147 = vmatmul.mubr.msk.bf16.vlgmr.msra.gmra.mrb[12].mxu1 %vm768_vm2, %v1950_v14  ;;  %v3383_v14 = vld [vmem:[%s3509_s15 + $0xc8] sm:$0xff]  }
 0xe06   : > { %3151 = vmatpush3.bf16.msra.mxu1 %v2004_v15  ;;  %3152 = vmatprep.mubr.msk.bf16.mxu1 %vm3431_vm0, %v3429_v5  ;;  %v3384_v15 = vld [vmem:[%s3509_s15 + $0x88] sm:$0xff]  }
 0xe07   : > { %2252 = vmatprep.subr.bf16.mxu1 %v3359_v39 }
 0xe08   : > { %v3408_v16 = vpop.eup %3407 }
 0xe09   : > { %v1949_v17 = vmul.f32 %v3408_v16, %v3404_v12  ;;  %v3385_v16 = vld [vmem:[%s3509_s15 + $0xd0] sm:$0xff]  }
 0xe0b   : > { %v1951_v18 = vpack.c.bf16 %v1949_v17, %v1949_v17  ;;  %v3386_v17 = vld [vmem:[%s3509_s15 + $0x90] sm:$0xff]  }
 0xe0d   : > { %3153 = vmatmul.mubr.msk.bf16.vlgmr.msra.gmra.mrb[16].mxu1 %vm768_vm2, %v1951_v18  ;;  %v3387_v18 = vld [vmem:[%s3509_s15 + $0xd8] sm:$0xff]  }
 0xe0e   : > { %2284 = vmatprep.mubr.bf16.mxu1 %v3430_v34  ;;  %2253 = vmatpush1.bf16.msra.mxu1 %v3357_v38 }
 0xe0f   : > { %2254 = vmatprep.subr.bf16.mxu1 %v3362_v40 }
 0xe12   : > { %2255 = vmatpush1.bf16.msra.mxu1 %v3360_v41 }
 0xed8   : > { %v1994_v22 = vpop.f32.mrb[12].mxu1 }
 0xed9   : > { %v3148_v23 = vpop.f32.mrb[13].mxu1 }
 0xeda   : > { %v1997_v24 = vpop.f32.mrb[14].mxu1  ;;  %v3392_v23 = vld [vmem:[%s3509_s15 + $0xa8] sm:$0xff]  }
 0xedb   : > { %v3149_v25 = vpop.f32.mrb[15].mxu1  ;;  %v3393_v24 = vld [vmem:[%s3509_s15 + $0xf0] sm:$0xff]  }
 0xedc   : > { %v3394_v25 = vld [vmem:[%s3509_s15 + $0xb0] sm:$0xff]  }
 0xee0   : > { %v2040_v26 = vpop.f32.mrb[16].mxu1 }
 0xee1   : > { %v2046_v27 = vpack.c.bf16 %v2040_v26, %v1994_v22  ;;  %v3154_v34 = vpop.f32.mrb[17].mxu1  ;;  %v3391_v22 = vld [vmem:[%s3509_s15 + $0xe8] sm:$0xff]   ;;  %v3395_v26 = vld [vmem:[%s3509_s15 + $0xf8] sm:$0xff]  }
 0xee2   : > { %v2043_v28 = vpop.f32.mrb[18].mxu1  ;;  %v2834_v34 = vld [vmem:[%s3663_s9 + $0x4] sm:$0x3] }
 0xee3   : > { %v3155_v29 = vpop.f32.mrb[19].mxu1  ;;  %3173 = vmatmul.mubr.bf16.vlgmr.msra.gmra.mrb[4].mxu0 %v2046_v27  ;;  %v3396_v27 = vld [vmem:[%s3509_s15 + $0xb8] sm:$0xff]   ;;  %v2165_v28 = vrot.slane %v2834_v34, %v1006_v54 }
 0xee4   : > { %3027 = vmatpush3.bf16.msra.mxu0 %v3382_v13  ;;  %v2169_v29 = vrot.slane %v2834_v34, %v1010_v57 }
 0xee5   : > { %3028 = vmatprep.subr.bf16.mxu0 %v3383_v14 }
 0xee8   : > { %3029 = vmatpush3.bf16.msra.mxu0 %v3384_v15 }
 0xee9   : > { %3030 = vmatprep.subr.bf16.mxu0 %v3385_v16 }
 0xeec   : > { %3031 = vmatpush3.bf16.msra.mxu0 %v3386_v17 }
 0xeed   : > { %3032 = vmatprep.subr.bf16.mxu0 %v3387_v18 }
 0xef0   : > { %3033 = vmatpush3.bf16.msra.mxu0 %v3388_v19 }
 0xef1   : > { %3034 = vmatprep.subr.bf16.mxu0 %v3389_v20 }
 0xef4   : > { %3035 = vmatpush3.bf16.msra.mxu0 %v3390_v21  ;;  %v2935_v21 = vld [vmem:[%s3663_s9 + $0x6] ss:$0 sm:$0xff] }
 0xef5   : > { %3036 = vmatprep.subr.bf16.mxu0 %v3391_v22 }
 0xef8   : > { %3037 = vmatpush3.bf16.msra.mxu0 %v3392_v23 }
 0xef9   : > { %3038 = vmatprep.subr.bf16.mxu0 %v3393_v24  ;;  %v2936_v24 = vld [vmem:[%s3663_s9 + $0x7] ss:$0 sm:$0xff] }
 0xefc   : > { %3039 = vmatpush3.bf16.msra.mxu0 %v3394_v25 }
 0xefd   : > { %3040 = vmatprep.subr.bf16.mxu0 %v3395_v26 }
 0xf00   : > { %3041 = vmatpush3.bf16.msra.mxu0 %v3396_v27 }
 0xfb6   : > { %v2129_v30 = vpop.f32.mrb[4].mxu0 }
 0xfb7   : > { %v3834_v5 = vadd.f32 %v3747_v33, %v2129_v30  ;;  %v3174_v31 = vpop.f32.mrb[5].mxu0  ;;  %v3365_v33 = vld [vmem:[%s3496_s11 + $0x1f4] ss:$24 sps:$4 sm:$0xff]  }
 0xfb8   : > { %v2132_v32 = vpop.f32.mrb[6].mxu0  ;;  %2256 = vmatprep.subr.bf16.mxu1 %v3365_v33 }
 0xfb9   : > { %v3837_v36 = vadd.f32 %v3752_v35, %v2132_v32  ;;  %2138 = vadd.xlane.f32.xlu0 %v3834_v5  ;;  %v3175_v37 = vpop.f32.mrb[7].mxu0  ;;  %2257 = vmatpush1.bf16.msra.mxu1 %v3363_v42 }
 0xfba   : > { %2258 = vmatprep.subr.bf16.mxu1 %v3368_v50 }
 0xfbb   : > { %2140 = vadd.xlane.f32.xlu1 %v3837_v36 }
 0xfbd   : > { %2259 = vmatpush1.bf16.msra.mxu1 %v3366_v51 }
 0xfbe   : > { %2260 = vmatprep.subr.bf16.mxu1 %v3371_v55 }
 0xfc1   : > { %2261 = vmatpush1.bf16.msra.mxu1 %v3369_v58 }
 0xfc2   : > { %2262 = vmatprep.subr.bf16.mxu1 %v3374_v60 }
 0xfc5   : > { %2263 = vmatpush1.bf16.msra.mxu1 %v3372_v61 }
 0xfc6   : > { %2264 = vmatprep.subr.bf16.mxu1 %v3377_v3 }
 0xfc9   : > { %2265 = vmatpush1.bf16.msra.mxu1 %v3375_v62 }
 0xfca   : > { %2266 = vmatprep.subr.bf16.mxu1 %v3380_v63 }
 0xfcd   : > { %2267 = vmatpush1.bf16.msra.mxu1 %v3378_v0 }
0x1046   : > { %v2139_v35 = vpop.xlane.xlu0 %2138 }
0x1047   : > { %v2142_v43 = vmul.f32 0.0078125, %v2139_v35 }
0x1048   : > { %v2141_v44 = vpop.xlane.xlu1 %2140 }
0x1049   : > { %v2144_v45 = vsub.f32 %v3834_v5, %v2142_v43  ;;  %v2143_v46 = vmul.f32 0.0078125, %v2141_v44 }
0x104b   : > { %v2145_v47 = vsub.f32 %v3837_v36, %v2143_v46  ;;  %v2146_v48 = vmul.f32 %v2144_v45, %v2144_v45 }
0x104d   : > { %2148 = vadd.xlane.f32.xlu0 %v2146_v48  ;;  %v2147_v49 = vmul.f32 %v2145_v47, %v2145_v47 }
0x104f   : > { %2150 = vadd.xlane.f32.xlu1 %v2147_v49 }
0x10da   : > { %v2149_v1 = vpop.xlane.xlu0 %2148 }
0x10db   : > { %v2152_v12 = vmul.f32 0.0078125, %v2149_v1 }
0x10dc   : > { %v2151_v4 = vpop.xlane.xlu1 %2150 }
0x10dd   : > { %v2154_v2 = vadd.f32 1e-05, %v2152_v12  ;;  %v2153_v7 = vmul.f32 0.0078125, %v2151_v4 }
0x10df   : > { %3409 = vrsqrt.f32 %v2154_v2  ;;  %v2155_v8 = vadd.f32 1e-05, %v2153_v7 }
0x10e1   : > { %3411 = vrsqrt.f32 %v2155_v8 }
0x10e9   : > { %v3410_v56 = vpop.eup %3409 }
0x10ea   : > { %v2158_v52 = vmul.f32 %v3410_v56, %v2144_v45 }
0x10eb   : > { %v3412_v59 = vpop.eup %3411 }
0x10ec   : > { %v2159_v9 = vmul.f32 %v3412_v59, %v2145_v47 }
0x10ee   : > { %v2160_v10 = vpack.c.bf16 %v2159_v9, %v2158_v52 }
0x10f0   : > { %2285 = vmatmul.mubr.bf16.vlgmr.msra.gmra.mrb[20].mxu1 %v2160_v10 }
0x11c3   : > { %v2286_v30 = vpop.f32.mrb[20].mxu1 }
0x11c4   : > { %v2287_v31 = vadd.f32 %v2286_v30, %v2165_v28  ;;  %v2288_v32 = vpop.f32.mrb[21].mxu1 }
0x11c5   : > { %v2289_v37 = vadd.f32 %v2288_v32, %v2169_v29  ;;  %v2290_v38 = vpop.f32.mrb[22].mxu1 }
0x11c6   : > { %v2295_v39 = vmul.f32 %v2287_v31, %v2287_v31  ;;  %v2291_v40 = vadd.f32 %v2290_v38, %v2165_v28  ;;  %v2292_v41 = vpop.f32.mrb[23].mxu1 }
0x11c7   : > { %v2296_v33 = vmul.f32 %v2289_v37, %v2289_v37  ;;  %v2293_v42 = vadd.f32 %v2292_v41, %v2169_v29 }
0x11c8   : > { %v2299_v35 = vmul.f32 %v2295_v39, %v2287_v31  ;;  %v2297_v43 = vmul.f32 %v2291_v40, %v2291_v40 }
0x11c9   : > { %v2300_v44 = vmul.f32 %v2296_v33, %v2289_v37  ;;  %v2298_v45 = vmul.f32 %v2293_v42, %v2293_v42 }
0x11ca   : > { %v2303_v46 = vmul.f32 0.044715, %v2299_v35  ;;  %v2301_v47 = vmul.f32 %v2297_v43, %v2291_v40 }
0x11cb   : > { %v2304_v54 = vmul.f32 0.044715, %v2300_v44  ;;  %v2302_v48 = vmul.f32 %v2298_v45, %v2293_v42 }
0x11cc   : > { %v2307_v53 = vadd.f32 %v2303_v46, %v2287_v31  ;;  %v2305_v57 = vmul.f32 0.044715, %v2301_v47 }
0x11cd   : > { %v2308_v49 = vadd.f32 %v2304_v54, %v2289_v37  ;;  %v2306_v50 = vmul.f32 0.044715, %v2302_v48 }
0x11ce   : > { %v2311_v51 = vmul.f32 0.7978846, %v2307_v53  ;;  %v2309_v55 = vadd.f32 %v2305_v57, %v2291_v40 }
0x11cf   : > { %v2312_v58 = vmul.f32 0.7978846, %v2308_v49  ;;  %v2310_v60 = vadd.f32 %v2306_v50, %v2293_v42 }
0x11d0   : > { %3413 = vtanh.f32 %v2311_v51  ;;  %v2313_v61 = vmul.f32 0.7978846, %v2309_v55 }
0x11d1   : > { %3415 = vtanh.f32 %v2312_v58  ;;  %v2314_v3 = vmul.f32 0.7978846, %v2310_v60 }
0x11d2   : > { %3417 = vtanh.f32 %v2313_v61 }
0x11d3   : > { %3419 = vtanh.f32 %v2314_v3 }
0x11da   : > { %v3414_v62 = vpop.eup %3413 }
0x11db   : > { %v3416_v63 = vpop.eup %3415  ;;  %v2319_v0 = vadd.f32 1.0, %v3414_v62 }
0x11dc   : > { %v3418_v1 = vpop.eup %3417  ;;  %v2320_v12 = vadd.f32 1.0, %v3416_v63 }
0x11dd   : > { %v3420_v4 = vpop.eup %3419  ;;  %v2323_v2 = vmul.f32 0.5, %v2319_v0  ;;  %v2321_v7 = vadd.f32 1.0, %v3418_v1 }
0x11de   : > { %v2322_v8 = vadd.f32 1.0, %v3420_v4  ;;  %v2324_v56 = vmul.f32 0.5, %v2320_v12 }
0x11df   : > { %v2325_v59 = vmul.f32 0.5, %v2321_v7  ;;  %v2327_v9 = vmul.f32 %v2323_v2, %v2287_v31 }
0x11e0   : > { %v2326_v52 = vmul.f32 0.5, %v2322_v8  ;;  %v2328_v11 = vmul.f32 %v2324_v56, %v2289_v37 }
0x11e1   : > { %v2329_v10 = vmul.f32 %v2325_v59, %v2291_v40 }
0x11e2   : > { %v2330_v13 = vmul.f32 %v2326_v52, %v2293_v42 }
0x11e3   : > { %v2331_v14 = vpack.c.bf16 %v2329_v10, %v2327_v9 }
0x11e4   : > { %v2332_v15 = vpack.c.bf16 %v2330_v13, %v2328_v11 }
0x11e6   : > { %2494 = vmatprep.mubr.bf16.mxu0 %v2332_v15 }
0x11e7   : > { %2495 = vmatmul.mubr.bf16.vlgmr.msra.gmra.mrb[8].mxu0 %v2331_v14 }
0x12ba   : > { %v3042_v16 = vpop.f32.mrb[8].mxu0 }
0x12bb   : > { %v3043_v17 = vpop.f32.mrb[9].mxu0 }
0x12bc   : > { %v3044_v18 = vadd.f32 %v3043_v17, %v3042_v16  ;;  %v3045_v19 = vpop.f32.mrb[10].mxu0 }
0x12bd   : > { %v3046_v20 = vpop.f32.mrb[11].mxu0 }
0x12be   : > { %v2503_v22 = vadd.f32 %v3044_v18, %v3834_v5  ;;  %v3047_v23 = vadd.f32 %v3046_v20, %v3045_v19 }
0x12c0   : > { %v2504_v25 = vadd.f32 %v3047_v23, %v3837_v36  ;;  %v2511_v26 = vadd.f32 %v2935_v21, %v2503_v22 }
0x12c2   : > { %v2519_v27 = vmul.f32 %v2936_v24, %v2511_v26  ;;  %v2512_v34 = vadd.f32 %v2935_v21, %v2504_v25 }
0x12c4   : > { %2521 = vadd.xlane.f32.xlu0 %v2519_v27  ;;  %v2520_v28 = vmul.f32 %v2936_v24, %v2512_v34 }
0x12c6   : > { %2523 = vadd.xlane.f32.xlu1 %v2520_v28 }
0x1351   : > { %v2522_v29 = vpop.xlane.xlu0 %2521 }
0x1352   : > { %v2530_v31 = vrot.slane %v2522_v29, %v3678_v6 }
0x1353   : > { %v2524_v30 = vpop.xlane.xlu1 %2523 }
0x1354   : > { %v2534_v32 = vrot.slane %v2524_v30, %v3678_v6 }
0x1356   : > { %v2535_v37 = vsel %vm1378_vm3, %v2534_v32, %v2530_v31 }
0x1357   : > { %2937 = vst.msk [vmem:[%s3685_s14 + $0x2] sm:$0x3] %vm1381_vm4, %v2535_v37 }
0x1358 PF: > { %s18_s24 = sadd.s32 1, %s3427_s24  }
0x1359   : > { %p15_p6 = scmp.ge.s32.totalorder %s18_s24, 4  }
0x135b   :  { %17 = sbr.rel (!%p15_p6) target bundleno = 1 (0x1), region = 104 }

</bundles_post_ra>
